<compile_context>
chip_gen: v7x
topology: tpu7x:2x2x1
jax: 0.10.0
libtpu: 0.0.40
codegen_flags: <defaults>
</compile_context>

<pallas_src>
import math
from functools import partial

import jax
import jax.numpy as jnp
from jax import lax
from jax.experimental import pallas as pl
from jax.experimental.pallas import tpu as pltpu


def _round_up(a, b):
    return (a + b - 1) // b * b


def _vmem_capacity_bytes():
    """Per-core physical VMEM (generation-aware), with a conservative fallback."""
    try:
        return int(pltpu.get_tpu_info().vmem_capacity_bytes)
    except Exception:
        return 64 << 20  # v7x per-core size: safe lower bound for all gens


def _vmem_limit_bytes(est_bytes, cap_bytes):
    """Scoped-VMEM budget: tile-plan estimate + headroom, capped at ~85% of
    the physical per-core VMEM (96+ MiB on v5e/v6e, ~54 MiB on v7x)."""
    hi = int(cap_bytes * 0.85)
    return int(min(max(est_bytes + (8 << 20), 32 << 20), hi))


# ---------------------------------------------------------------------------
# Kernel 1: fused QKV projection.
#   grid = (batch, seq_tile); the fused (H, 3H) bf16 weight has a constant
#   index_map (DMA'd once, VMEM-resident).  One MXU call per tile.
# ---------------------------------------------------------------------------
def _qkv_proj_kernel(x_ref, wqkv_ref, q_ref, k_ref, v_ref, *,
                     num_heads, head_dim):
    H = num_heads * head_dim
    x = x_ref[0]                                                   # (bq, H) bf16
    qkv = jnp.dot(x, wqkv_ref[...],
                  preferred_element_type=jnp.float32)              # (bq, 3H) f32
    # Split columns into per-head q/k/v slabs (static, unrolled).  The
    # 1/sqrt(head_dim) scale was folded into the q columns of wqkv.
    for h in range(num_heads):
        lo, hi = h * head_dim, (h + 1) * head_dim
        q_ref[0, h] = qkv[:, lo:hi].astype(q_ref.dtype)
        k_ref[0, h] = qkv[:, H + lo:H + hi].astype(k_ref.dtype)
        v_ref[0, h] = qkv[:, 2 * H + lo:2 * H + hi].astype(v_ref.dtype)


# ---------------------------------------------------------------------------
# Kernel 2: all-heads flash attention with fused output projection.
#   grid = (batch, q_tile, kv_tile); kv_tile is the accumulation axis
#   ("arbitrary"); m/l/acc live in VMEM scratch (init / finalize via pl.when).
# ---------------------------------------------------------------------------
def _flash_attn_kernel(q_ref, k_ref, v_ref, wo_ref, out_ref,
                       m_ref, l_ref, acc_ref, *, block_q, block_k):
    qi = pl.program_id(1)
    ki = pl.program_id(2)

    # Last kv tile intersecting the causal region of this q tile (== qi when
    # block_q == block_k).  Tiles beyond it are skipped; their k/v index_map
    # is clamped so no DMA is issued for them either.
    last_ki = ((qi + 1) * block_q - 1) // block_k
    # Tile is fully below the diagonal (no mask needed) iff its largest key
    # index <= the smallest query index of this q tile.
    fully_unmasked = (ki + 1) * block_k - 1 <= qi * block_q

    @pl.when(ki == 0)
    def _init():
        m_ref[...] = jnp.full_like(m_ref, -jnp.inf)
        l_ref[...] = jnp.zeros_like(l_ref)
        acc_ref[...] = jnp.zeros_like(acc_ref)

    def _online_softmax_update(apply_mask):
        q = q_ref[0]                                         # (nh, bq, d) bf16
        k = k_ref[0]                                         # (nh, bk, d) bf16
        v = v_ref[0]                                         # (nh, bk, d) bf16
        s = jnp.einsum("hqd,hkd->hqk", q, k,
                       preferred_element_type=jnp.float32)   # (nh, bq, bk) f32
        if apply_mask:
            row = qi * block_q + lax.broadcasted_iota(
                jnp.int32, (block_q, block_k), 0)
            col = ki * block_k + lax.broadcasted_iota(
                jnp.int32, (block_q, block_k), 1)
            # kv tile 0 always contains key 0 <= row, so no row is ever fully
            # masked on the first processed tile -> m_new stays finite.
            s = jnp.where(col > row, -jnp.inf, s)            # broadcast over heads

        m_prev = m_ref[...]
        m_new = jnp.maximum(m_prev, jnp.max(s, axis=-1, keepdims=True))
        alpha = jnp.exp(m_prev - m_new)
        p = jnp.exp(s - m_new)
        l_ref[...] = alpha * l_ref[...] + jnp.sum(p, axis=-1, keepdims=True)
        acc_ref[...] = alpha * acc_ref[...] + jnp.einsum(
            "hqk,hkd->hqd", p.astype(jnp.bfloat16), v,
            preferred_element_type=jnp.float32)
        m_ref[...] = m_new

    @pl.when((ki <= last_ki) & fully_unmasked)
    def _interior_tile():
        _online_softmax_update(apply_mask=False)

    @pl.when((ki <= last_ki) & jnp.logical_not(fully_unmasked))
    def _diagonal_tile():
        _online_softmax_update(apply_mask=True)

    @pl.when(ki == last_ki)
    def _finalize():
        nh, bq, d = acc_ref.shape
        ctx = acc_ref[...] / l_ref[...]                      # exact divide (once per tile)
        ctx = jnp.transpose(ctx, (1, 0, 2)).reshape(bq, nh * d)   # (bq, H) lane-dense
        out_ref[0] = jnp.dot(ctx.astype(jnp.bfloat16), wo_ref[...],
                             preferred_element_type=jnp.float32
                             ).astype(out_ref.dtype)


# ---------------------------------------------------------------------------
# Wrapper
# ---------------------------------------------------------------------------
def bitnet_v3_attention(hidden_states, wq, wk, wv, wo, *, num_heads,
                        block_q=256, block_k=256):
    """hidden_states: [B, S, H].  w*: [H_out, H_in] (PyTorch nn.Linear layout)."""
    B, S, H = hidden_states.shape
    d = H // num_heads
    if d * num_heads != H:
        raise ValueError(f"hidden_size {H} not divisible by num_heads {num_heads}")

    # --- tile plan + sequence padding (fixed tile size, never a full-S block)
    bq = min(block_q, _round_up(S, 128))
    bk = min(block_k, _round_up(S, 128))
    if bq % bk != 0 and bk % bq != 0:
        bk = bq
    S_pad = _round_up(S, max(bq, bk))
    n_s = S_pad // bq
    n_kv = S_pad // bk

    # --- inputs: bf16 once, scale folded into Wq, fused QKV weight.
    x = hidden_states.astype(jnp.bfloat16)
    if S_pad != S:
        x = jnp.pad(x, ((0, 0), (0, S_pad - S), (0, 0)))
    inv_sqrt_d = 1.0 / math.sqrt(d)
    wqkv = jnp.concatenate([wq.T * inv_sqrt_d, wk.T, wv.T],
                           axis=1).astype(jnp.bfloat16)            # (H, 3H)
    wo_t = wo.T.astype(jnp.bfloat16)                               # (H, H)

    cap = _vmem_capacity_bytes()

    # ---------------- Kernel 1: fused QKV projection ----------------
    qkv_shape = jax.ShapeDtypeStruct((B, num_heads, S_pad, d), jnp.bfloat16)
    head_out_spec = pl.BlockSpec((1, num_heads, bq, d), lambda b, si: (b, 0, si, 0))
    est1 = (2 * bq * H * 2                      # x block (double-buffered)
            + 2 * H * 3 * H * 2                 # resident fused weight (conservative x2)
            + 3 * 2 * num_heads * bq * d * 2    # q/k/v output blocks
            + bq * 3 * H * 4)                   # (bq, 3H) f32 intermediate headroom

    q, k, v = pl.pallas_call(
        partial(_qkv_proj_kernel, num_heads=num_heads, head_dim=d),
        out_shape=(qkv_shape, qkv_shape, qkv_shape),
        grid_spec=pltpu.PrefetchScalarGridSpec(
            num_scalar_prefetch=0,
            grid=(B, n_s),
            in_specs=[
                pl.BlockSpec((1, bq, H), lambda b, si: (b, si, 0)),
                pl.BlockSpec((H, 3 * H), lambda b, si: (0, 0)),   # weight resident
            ],
            out_specs=[head_out_spec, head_out_spec, head_out_spec]),
        compiler_params=pltpu.CompilerParams(
            dimension_semantics=("parallel", "parallel"),
            vmem_limit_bytes=_vmem_limit_bytes(est1, cap)),
    )(x, wqkv)

    # ---------------- Kernel 2: flash attention + fused Wo ----------------
    def kv_map(b, qi, ki):
        # Clamp to the last causally-relevant kv tile so skipped (above the
        # diagonal) steps re-reference the same block and their DMA is elided.
        return (b, 0, jnp.minimum(ki, ((qi + 1) * bq - 1) // bk), 0)

    est2 = (2 * num_heads * bq * d * 2          # q block
            + 2 * 2 * num_heads * bk * d * 2    # k, v blocks
            + 2 * H * H * 2                     # resident Wo (conservative x2)
            + 2 * bq * H * 4                    # output block
            + 2 * num_heads * bq * 128 * 4      # m, l scratch (lane-padded)
            + num_heads * bq * d * 4            # acc scratch
            + 3 * num_heads * bq * bk * 4)      # score/prob intermediates headroom

    out = pl.pallas_call(
        partial(_flash_attn_kernel, block_q=bq, block_k=bk),
        out_shape=jax.ShapeDtypeStruct((B, S_pad, H), hidden_states.dtype),
        grid_spec=pltpu.PrefetchScalarGridSpec(
            num_scalar_prefetch=0,
            grid=(B, n_s, n_kv),
            in_specs=[
                pl.BlockSpec((1, num_heads, bq, d), lambda b, qi, ki: (b, 0, qi, 0)),
                pl.BlockSpec((1, num_heads, bk, d), kv_map),
                pl.BlockSpec((1, num_heads, bk, d), kv_map),
                pl.BlockSpec((H, H), lambda b, qi, ki: (0, 0)),   # Wo resident
            ],
            out_specs=pl.BlockSpec((1, bq, H), lambda b, qi, ki: (b, qi, 0)),
            scratch_shapes=[
                pltpu.VMEM((num_heads, bq, 1), jnp.float32),   # running max m
                pltpu.VMEM((num_heads, bq, 1), jnp.float32),   # running denom l
                pltpu.VMEM((num_heads, bq, d), jnp.float32),   # weighted-V acc
            ]),
        compiler_params=pltpu.CompilerParams(
            dimension_semantics=("parallel", "parallel", "arbitrary"),
            vmem_limit_bytes=_vmem_limit_bytes(est2, cap)),
    )(q, k, v, wo_t)

    if S_pad != S:
        out = out[:, :S, :]
    return out


# ---------------------------------------------------------------------------
# Pure-JAX reference matching the PyTorch forward (no mask, no cache).
# ---------------------------------------------------------------------------
def _reference_attention(x, wq, wk, wv, wo, *, num_heads):
    B, S, H = x.shape
    d = H // num_heads
    q = x @ wq.T
    k = x @ wk.T
    v = x @ wv.T
    q = q.reshape(B, S, num_heads, d).transpose(0, 2, 1, 3)
    k = k.reshape(B, S, num_heads, d).transpose(0, 2, 1, 3)
    v = v.reshape(B, S, num_heads, d).transpose(0, 2, 1, 3)
    scores = jnp.einsum("bhqd,bhkd->bhqk", q, k) / math.sqrt(d)
    causal = jnp.triu(jnp.ones((S, S), dtype=bool), k=1)
    scores = jnp.where(causal[None, None], -jnp.inf, scores)
    w = jax.nn.softmax(scores, axis=-1)
    ctx = jnp.einsum("bhqk,bhkd->bhqd", w, v)
    ctx = ctx.transpose(0, 2, 1, 3).reshape(B, S, H)
    return ctx @ wo.T


if __name__ == "__main__":
    # Small config: batch=2, seq=8, hidden=32, num_heads=4 (head_dim=8).
    B, S, H, NUM_HEADS = 2, 8, 32, 4

    key = jax.random.PRNGKey(0)
    kx, kq, kk, kv, ko = jax.random.split(key, 5)

    hidden_states = jax.random.normal(kx, (B, S, H), dtype=jnp.float32)
    scale = 1.0 / math.sqrt(H)
    wq = jax.random.normal(kq, (H, H), dtype=jnp.float32) * scale  # [out, in]
    wk = jax.random.normal(kk, (H, H), dtype=jnp.float32) * scale
    wv = jax.random.normal(kv, (H, H), dtype=jnp.float32) * scale
    wo = jax.random.normal(ko, (H, H), dtype=jnp.float32) * scale

    out = bitnet_v3_attention(hidden_states, wq, wk, wv, wo,
                              num_heads=NUM_HEADS)
    out = jax.block_until_ready(out)

    ref = _reference_attention(hidden_states, wq, wk, wv, wo,
                               num_heads=NUM_HEADS)
    assert out.shape == (B, S, H)
    # bf16 MXU operands / bf16 weights vs f32 reference -> loose tolerance.
    err = float(jnp.max(jnp.abs(out - ref)))
    assert jnp.allclose(out, ref, atol=7.5e-2, rtol=5e-2), f"max abs err {err}"

    print("KERNEL_OK")
</pallas_src>

<mosaic_0001>
module attributes {stable_mosaic.version = 11 : i64} {
  func.func @_qkv_proj_kernel(%arg0: i32, %arg1: i32, %arg2: memref<1x128x32xbf16, #tpu.memory_space<vmem>>, %arg3: memref<32x96xbf16, #tpu.memory_space<vmem>>, %arg4: memref<1x4x128x8xbf16, #tpu.memory_space<vmem>>, %arg5: memref<1x4x128x8xbf16, #tpu.memory_space<vmem>>, %arg6: memref<1x4x128x8xbf16, #tpu.memory_space<vmem>>) attributes {dimension_semantics = [#tpu.dimension_semantics<parallel>, #tpu.dimension_semantics<parallel>], iteration_bounds = array<i64: 2, 1>, scalar_prefetch = 0 : i64, scratch_operands = 0 : i64, tpu.core_type = #tpu.core_type<tc>, window_params = [{transform_indices = @transform_0, window_bounds = array<i64: 1, 128, 32>}, {pipeline_mode = #tpu.pipeline_mode<synchronous>, transform_indices = @transform_1, window_bounds = array<i64: 32, 96>}, {transform_indices = @transform_2, window_bounds = array<i64: 1, 4, 128, 8>}, {transform_indices = @transform_3, window_bounds = array<i64: 1, 4, 128, 8>}, {transform_indices = @transform_4, window_bounds = array<i64: 1, 4, 128, 8>}]} {
    %c0 = arith.constant 0 : index
    %c0_0 = arith.constant 0 : index
    %c0_1 = arith.constant 0 : index
    %0 = vector.load %arg2[%c0, %c0_0, %c0_1] : memref<1x128x32xbf16, #tpu.memory_space<vmem>>, vector<1x128x32xbf16>
    %1 = vector.shape_cast %0 : vector<1x128x32xbf16> to vector<128x32xbf16>
    %c0_2 = arith.constant 0 : index
    %c0_3 = arith.constant 0 : index
    %2 = vector.load %arg3[%c0_2, %c0_3] : memref<32x96xbf16, #tpu.memory_space<vmem>>, vector<32x96xbf16>
    %cst = arith.constant dense<0.000000e+00> : vector<128x96xf32>
    %3 = tpu.matmul %1, %2, %cst {dimension_numbers = #tpu.dot_dimension_numbers<[1], [0], [0], [1], [0, 0, 1, 1], [], []>} : vector<128x32xbf16>, vector<32x96xbf16>, vector<128x96xf32> -> vector<128x96xf32>
    %4 = vector.extract_strided_slice %3 {offsets = [0, 0], sizes = [128, 8], strides = [1, 1]} : vector<128x96xf32> to vector<128x8xf32>
    %5 = arith.truncf %4 : vector<128x8xf32> to vector<128x8xbf16>
    %c0_4 = arith.constant 0 : index
    %c0_5 = arith.constant 0 : index
    %c0_6 = arith.constant 0 : index
    %c0_7 = arith.constant 0 : index
    %6 = vector.load %arg4[%c0_4, %c0_5, %c0_6, %c0_7] : memref<1x4x128x8xbf16, #tpu.memory_space<vmem>>, vector<1x1x128x8xbf16>
    %7 = vector.shape_cast %6 : vector<1x1x128x8xbf16> to vector<128x8xbf16>
    %8 = vector.shape_cast %5 : vector<128x8xbf16> to vector<1x1x128x8xbf16>
    tpu.vector_store %arg4[%c0_4, %c0_5, %c0_6, %c0_7], %8 {strides = array<i32>} : memref<1x4x128x8xbf16, #tpu.memory_space<vmem>>, vector<1x1x128x8xbf16>,
    %9 = vector.extract_strided_slice %3 {offsets = [0, 32], sizes = [128, 8], strides = [1, 1]} : vector<128x96xf32> to vector<128x8xf32>
    %10 = arith.truncf %9 : vector<128x8xf32> to vector<128x8xbf16>
    %c0_8 = arith.constant 0 : index
    %c0_9 = arith.constant 0 : index
    %c0_10 = arith.constant 0 : index
    %c0_11 = arith.constant 0 : index
    %11 = vector.load %arg5[%c0_8, %c0_9, %c0_10, %c0_11] : memref<1x4x128x8xbf16, #tpu.memory_space<vmem>>, vector<1x1x128x8xbf16>
    %12 = vector.shape_cast %11 : vector<1x1x128x8xbf16> to vector<128x8xbf16>
    %13 = vector.shape_cast %10 : vector<128x8xbf16> to vector<1x1x128x8xbf16>
    tpu.vector_store %arg5[%c0_8, %c0_9, %c0_10, %c0_11], %13 {strides = array<i32>} : memref<1x4x128x8xbf16, #tpu.memory_space<vmem>>, vector<1x1x128x8xbf16>,
    %14 = vector.extract_strided_slice %3 {offsets = [0, 64], sizes = [128, 8], strides = [1, 1]} : vector<128x96xf32> to vector<128x8xf32>
    %15 = arith.truncf %14 : vector<128x8xf32> to vector<128x8xbf16>
    %c0_12 = arith.constant 0 : index
    %c0_13 = arith.constant 0 : index
    %c0_14 = arith.constant 0 : index
    %c0_15 = arith.constant 0 : index
    %16 = vector.load %arg6[%c0_12, %c0_13, %c0_14, %c0_15] : memref<1x4x128x8xbf16, #tpu.memory_space<vmem>>, vector<1x1x128x8xbf16>
    %17 = vector.shape_cast %16 : vector<1x1x128x8xbf16> to vector<128x8xbf16>
    %18 = vector.shape_cast %15 : vector<128x8xbf16> to vector<1x1x128x8xbf16>
    tpu.vector_store %arg6[%c0_12, %c0_13, %c0_14, %c0_15], %18 {strides = array<i32>} : memref<1x4x128x8xbf16, #tpu.memory_space<vmem>>, vector<1x1x128x8xbf16>,
    %19 = vector.extract_strided_slice %3 {offsets = [0, 8], sizes = [128, 8], strides = [1, 1]} : vector<128x96xf32> to vector<128x8xf32>
    %20 = arith.truncf %19 : vector<128x8xf32> to vector<128x8xbf16>
    %c0_16 = arith.constant 0 : index
    %c1 = arith.constant 1 : index
    %c0_17 = arith.constant 0 : index
    %c0_18 = arith.constant 0 : index
    %21 = vector.load %arg4[%c0_16, %c1, %c0_17, %c0_18] : memref<1x4x128x8xbf16, #tpu.memory_space<vmem>>, vector<1x1x128x8xbf16>
    %22 = vector.shape_cast %21 : vector<1x1x128x8xbf16> to vector<128x8xbf16>
    %23 = vector.shape_cast %20 : vector<128x8xbf16> to vector<1x1x128x8xbf16>
    tpu.vector_store %arg4[%c0_16, %c1, %c0_17, %c0_18], %23 {strides = array<i32>} : memref<1x4x128x8xbf16, #tpu.memory_space<vmem>>, vector<1x1x128x8xbf16>,
    %24 = vector.extract_strided_slice %3 {offsets = [0, 40], sizes = [128, 8], strides = [1, 1]} : vector<128x96xf32> to vector<128x8xf32>
    %25 = arith.truncf %24 : vector<128x8xf32> to vector<128x8xbf16>
    %c0_19 = arith.constant 0 : index
    %c1_20 = arith.constant 1 : index
    %c0_21 = arith.constant 0 : index
    %c0_22 = arith.constant 0 : index
    %26 = vector.load %arg5[%c0_19, %c1_20, %c0_21, %c0_22] : memref<1x4x128x8xbf16, #tpu.memory_space<vmem>>, vector<1x1x128x8xbf16>
    %27 = vector.shape_cast %26 : vector<1x1x128x8xbf16> to vector<128x8xbf16>
    %28 = vector.shape_cast %25 : vector<128x8xbf16> to vector<1x1x128x8xbf16>
    tpu.vector_store %arg5[%c0_19, %c1_20, %c0_21, %c0_22], %28 {strides = array<i32>} : memref<1x4x128x8xbf16, #tpu.memory_space<vmem>>, vector<1x1x128x8xbf16>,
    %29 = vector.extract_strided_slice %3 {offsets = [0, 72], sizes = [128, 8], strides = [1, 1]} : vector<128x96xf32> to vector<128x8xf32>
    %30 = arith.truncf %29 : vector<128x8xf32> to vector<128x8xbf16>
    %c0_23 = arith.constant 0 : index
    %c1_24 = arith.constant 1 : index
    %c0_25 = arith.constant 0 : index
    %c0_26 = arith.constant 0 : index
    %31 = vector.load %arg6[%c0_23, %c1_24, %c0_25, %c0_26] : memref<1x4x128x8xbf16, #tpu.memory_space<vmem>>, vector<1x1x128x8xbf16>
    %32 = vector.shape_cast %31 : vector<1x1x128x8xbf16> to vector<128x8xbf16>
    %33 = vector.shape_cast %30 : vector<128x8xbf16> to vector<1x1x128x8xbf16>
    tpu.vector_store %arg6[%c0_23, %c1_24, %c0_25, %c0_26], %33 {strides = array<i32>} : memref<1x4x128x8xbf16, #tpu.memory_space<vmem>>, vector<1x1x128x8xbf16>,
    %34 = vector.extract_strided_slice %3 {offsets = [0, 16], sizes = [128, 8], strides = [1, 1]} : vector<128x96xf32> to vector<128x8xf32>
    %35 = arith.truncf %34 : vector<128x8xf32> to vector<128x8xbf16>
    %c0_27 = arith.constant 0 : index
    %c2 = arith.constant 2 : index
    %c0_28 = arith.constant 0 : index
    %c0_29 = arith.constant 0 : index
    %36 = vector.load %arg4[%c0_27, %c2, %c0_28, %c0_29] : memref<1x4x128x8xbf16, #tpu.memory_space<vmem>>, vector<1x1x128x8xbf16>
    %37 = vector.shape_cast %36 : vector<1x1x128x8xbf16> to vector<128x8xbf16>
    %38 = vector.shape_cast %35 : vector<128x8xbf16> to vector<1x1x128x8xbf16>
    tpu.vector_store %arg4[%c0_27, %c2, %c0_28, %c0_29], %38 {strides = array<i32>} : memref<1x4x128x8xbf16, #tpu.memory_space<vmem>>, vector<1x1x128x8xbf16>,
    %39 = vector.extract_strided_slice %3 {offsets = [0, 48], sizes = [128, 8], strides = [1, 1]} : vector<128x96xf32> to vector<128x8xf32>
    %40 = arith.truncf %39 : vector<128x8xf32> to vector<128x8xbf16>
    %c0_30 = arith.constant 0 : index
    %c2_31 = arith.constant 2 : index
    %c0_32 = arith.constant 0 : index
    %c0_33 = arith.constant 0 : index
    %41 = vector.load %arg5[%c0_30, %c2_31, %c0_32, %c0_33] : memref<1x4x128x8xbf16, #tpu.memory_space<vmem>>, vector<1x1x128x8xbf16>
    %42 = vector.shape_cast %41 : vector<1x1x128x8xbf16> to vector<128x8xbf16>
    %43 = vector.shape_cast %40 : vector<128x8xbf16> to vector<1x1x128x8xbf16>
    tpu.vector_store %arg5[%c0_30, %c2_31, %c0_32, %c0_33], %43 {strides = array<i32>} : memref<1x4x128x8xbf16, #tpu.memory_space<vmem>>, vector<1x1x128x8xbf16>,
    %44 = vector.extract_strided_slice %3 {offsets = [0, 80], sizes = [128, 8], strides = [1, 1]} : vector<128x96xf32> to vector<128x8xf32>
    %45 = arith.truncf %44 : vector<128x8xf32> to vector<128x8xbf16>
    %c0_34 = arith.constant 0 : index
    %c2_35 = arith.constant 2 : index
    %c0_36 = arith.constant 0 : index
    %c0_37 = arith.constant 0 : index
    %46 = vector.load %arg6[%c0_34, %c2_35, %c0_36, %c0_37] : memref<1x4x128x8xbf16, #tpu.memory_space<vmem>>, vector<1x1x128x8xbf16>
    %47 = vector.shape_cast %46 : vector<1x1x128x8xbf16> to vector<128x8xbf16>
    %48 = vector.shape_cast %45 : vector<128x8xbf16> to vector<1x1x128x8xbf16>
    tpu.vector_store %arg6[%c0_34, %c2_35, %c0_36, %c0_37], %48 {strides = array<i32>} : memref<1x4x128x8xbf16, #tpu.memory_space<vmem>>, vector<1x1x128x8xbf16>,
    %49 = vector.extract_strided_slice %3 {offsets = [0, 24], sizes = [128, 8], strides = [1, 1]} : vector<128x96xf32> to vector<128x8xf32>
    %50 = arith.truncf %49 : vector<128x8xf32> to vector<128x8xbf16>
    %c0_38 = arith.constant 0 : index
    %c3 = arith.constant 3 : index
    %c0_39 = arith.constant 0 : index
    %c0_40 = arith.constant 0 : index
    %51 = vector.load %arg4[%c0_38, %c3, %c0_39, %c0_40] : memref<1x4x128x8xbf16, #tpu.memory_space<vmem>>, vector<1x1x128x8xbf16>
    %52 = vector.shape_cast %51 : vector<1x1x128x8xbf16> to vector<128x8xbf16>
    %53 = vector.shape_cast %50 : vector<128x8xbf16> to vector<1x1x128x8xbf16>
    tpu.vector_store %arg4[%c0_38, %c3, %c0_39, %c0_40], %53 {strides = array<i32>} : memref<1x4x128x8xbf16, #tpu.memory_space<vmem>>, vector<1x1x128x8xbf16>,
    %54 = vector.extract_strided_slice %3 {offsets = [0, 56], sizes = [128, 8], strides = [1, 1]} : vector<128x96xf32> to vector<128x8xf32>
    %55 = arith.truncf %54 : vector<128x8xf32> to vector<128x8xbf16>
    %c0_41 = arith.constant 0 : index
    %c3_42 = arith.constant 3 : index
    %c0_43 = arith.constant 0 : index
    %c0_44 = arith.constant 0 : index
    %56 = vector.load %arg5[%c0_41, %c3_42, %c0_43, %c0_44] : memref<1x4x128x8xbf16, #tpu.memory_space<vmem>>, vector<1x1x128x8xbf16>
    %57 = vector.shape_cast %56 : vector<1x1x128x8xbf16> to vector<128x8xbf16>
    %58 = vector.shape_cast %55 : vector<128x8xbf16> to vector<1x1x128x8xbf16>
    tpu.vector_store %arg5[%c0_41, %c3_42, %c0_43, %c0_44], %58 {strides = array<i32>} : memref<1x4x128x8xbf16, #tpu.memory_space<vmem>>, vector<1x1x128x8xbf16>,
    %59 = vector.extract_strided_slice %3 {offsets = [0, 88], sizes = [128, 8], strides = [1, 1]} : vector<128x96xf32> to vector<128x8xf32>
    %60 = arith.truncf %59 : vector<128x8xf32> to vector<128x8xbf16>
    %c0_45 = arith.constant 0 : index
    %c3_46 = arith.constant 3 : index
    %c0_47 = arith.constant 0 : index
    %c0_48 = arith.constant 0 : index
    %61 = vector.load %arg6[%c0_45, %c3_46, %c0_47, %c0_48] : memref<1x4x128x8xbf16, #tpu.memory_space<vmem>>, vector<1x1x128x8xbf16>
    %62 = vector.shape_cast %61 : vector<1x1x128x8xbf16> to vector<128x8xbf16>
    %63 = vector.shape_cast %60 : vector<128x8xbf16> to vector<1x1x128x8xbf16>
    tpu.vector_store %arg6[%c0_45, %c3_46, %c0_47, %c0_48], %63 {strides = array<i32>} : memref<1x4x128x8xbf16, #tpu.memory_space<vmem>>, vector<1x1x128x8xbf16>,
    return
  }
  func.func @transform_0(%arg0: i32, %arg1: i32) -> (i32, i32, i32) {
    %c0_i32 = arith.constant 0 : i32
    %c0_i32_0 = arith.constant 0 : i32
    return %arg0, %arg1, %c0_i32 : i32, i32, i32
  }
  func.func @transform_1(%arg0: i32, %arg1: i32) -> (i32, i32) {
    %c0_i32 = arith.constant 0 : i32
    %c0_i32_0 = arith.constant 0 : i32
    %c0_i32_1 = arith.constant 0 : i32
    return %c0_i32, %c0_i32_0 : i32, i32
  }
  func.func @transform_2(%arg0: i32, %arg1: i32) -> (i32, i32, i32, i32) {
    %c0_i32 = arith.constant 0 : i32
    %c0_i32_0 = arith.constant 0 : i32
    %c0_i32_1 = arith.constant 0 : i32
    return %arg0, %c0_i32, %arg1, %c0_i32_0 : i32, i32, i32, i32
  }
  func.func @transform_3(%arg0: i32, %arg1: i32) -> (i32, i32, i32, i32) {
    %c0_i32 = arith.constant 0 : i32
    %c0_i32_0 = arith.constant 0 : i32
    %c0_i32_1 = arith.constant 0 : i32
    return %arg0, %c0_i32, %arg1, %c0_i32_0 : i32, i32, i32, i32
  }
  func.func @transform_4(%arg0: i32, %arg1: i32) -> (i32, i32, i32, i32) {
    %c0_i32 = arith.constant 0 : i32
    %c0_i32_0 = arith.constant 0 : i32
    %c0_i32_1 = arith.constant 0 : i32
    return %arg0, %c0_i32, %arg1, %c0_i32_0 : i32, i32, i32, i32
  }
}

</mosaic_0001>

<bundles_post_ra>
// kernel: tpu_custom_call.1
= control target key start
LH: loop header
LB: loop body
LE: loop exit
PB: predicated region body
PF: predicated region fallthrough
CT: control target
= control target key end

     0   :  { %s1812_s15 = smov 0   ;;  %s1814_s16 = smov 0   ;;  %s2660_s0 = inlined_call_operand.vmem [shape: bf16[2,128,32], index: 0, kind: input, shape index: {}]   ;;  %s2661_s1 = inlined_call_operand.vmem [shape: bf16[32,96], index: 1, kind: input, shape index: {}]   ;;  %s2662_s2 = inlined_call_operand.vmem [shape: bf16[2,4,128,8], index: 2, kind: output, shape index: {0}]   ;;  %s2663_s3 = inlined_call_operand.vmem [shape: bf16[2,4,128,8], index: 3, kind: output, shape index: {1}]   ;;  %s2664_s4 = inlined_call_operand.vmem [shape: bf16[2,4,128,8], index: 4, kind: output, shape index: {2}]  }
   0x1   :  { %s1816_s17 = smov 0  }
   0x2 LB: > { %s27_s18 = sadd.s32 1, %s1770_s16  ;;  %p1464_p0 = scmp.ge.s32.totalorder %s1774_s17, 1  ;;  %s1774_s17 = sphi %s1816_s17, %s15_s17   ;;  %s1770_s16 = sphi %s1814_s16, %s2666_s16   ;;  %s1766_s15 = sphi %s1812_s15, %s2665_s15  }
   0x3   : > { %p29_p1 = scmp.ge.s32.totalorder %s27_s18, 2  ;;  %p192_p2 = scmp.lt.s32.totalorder %s1774_s17, 3 }
   0x5   : > { %s2668_s18 = smov (%p29_p1, %s27_s18), 0  ;;  %p193_p3 = pnand %p1464_p0, %p192_p2 }
   0x6   : > { %v1742_v0 = vld [vmem:[%s2661_s1] sm:$0xff] (!%p193_p3)   ;;  %p245_p4 = scmp.lt.s32.totalorder (!%p193_p3), %s1766_s15, 1  ;;  %v1743_v1 = vld [vmem:[%s2661_s1 + $0x8] sm:$0xff] (!%p193_p3)   ;;  %vm357_vm0 = vcmask (!%p193_p3), 261120   ;;  %vm543_vm1 = vcmask (!%p193_p3), 60416   ;;  %s1776_s5 = smov (!%p193_p3), 96  }
   0x7   : > { %196 = sbr.rel (%p193_p3) target bundleno = 698 (0x2ba), region = 28  ;;  %1683 = vmatprep.subr.bf16.mxu0 (!%p193_p3), %v1742_v0  ;;  %1703 = vmatprep.subr.bf16.mxu1 (!%p193_p3), %v1742_v0  ;;  %s1777_s6 = smov (!%p193_p3), 64  }
   0x8   : > { %1684 = vmatpush3.bf16.msra.mxu0 (!%p193_p3), %v1742_v0  ;;  %1705 = vmatpush3.bf16.msra.mxu1 (!%p193_p3), %v1742_v0  ;;  %s1778_s7 = smov (!%p193_p3), 120   ;;  %s1779_s8 = smov (!%p193_p3), 88  }
   0x9   : > { %1685 = vmatprep.subr.bf16.mxu0 (!%p193_p3), %v1743_v1  ;;  %1704 = vmatprep.subr.bf16.mxu1 (!%p193_p3), %v1743_v1  ;;  %s1780_s9 = smov (!%p193_p3), 56   ;;  %s1781_s10 = smov (!%p193_p3), 112  }
   0xa   : > { %s1782_s11 = smov (!%p193_p3), 80   ;;  %s1783_s12 = smov (!%p193_p3), 48  }
   0xb   : > { %s1784_s22 = smov (!%p193_p3), 104   ;;  %s1786_s24 = smov (!%p193_p3), 40  }
   0xc   : > { %1686 = vmatpush3.bf16.msra.mxu0 (!%p193_p3), %v1743_v1  ;;  %1706 = vmatpush3.bf16.msra.mxu1 (!%p193_p3), %v1743_v1 }
   0xe   : > { %s2670_s15 = smov (!%p245_p4, %s1766_s15), 1 }
   0xf   : > { %s1653_s23 = sshll.u32 %s2670_s15, 6  ;;  %s1847_s27 = sshll.u32 %s2670_s15, 8 }
  0x10   : > { %s252_s26 = scalar_lea.vmem %s2660_s0, %s1653_s23  ;;  %s1853_s30 = scalar_lea.vmem %s2662_s2, %s1847_s27 }
  0x11   : > { %v1744_v2 = vld [vmem:[%s252_s26] sm:$0xff]   ;;  %v1746_v4 = vld [vmem:[%s252_s26 + $0x8] sm:$0xff]   ;;  %v1748_v6 = vld [vmem:[%s252_s26 + $0x10] sm:$0xff]   ;;  %s2053_s15 = scalar_lea.vmem %s2663_s3, %s1847_s27  ;;  %s2069_s21 = scalar_lea.vmem %s2664_s4, %s1847_s27 }
  0x12   : > { %v1745_v3 = vld [vmem:[%s252_s26 + $0x20] sm:$0xff]   ;;  %1687 = vmatprep.mubr.msk.bf16.mxu0 %vm357_vm0, %v1744_v2  ;;  %v1747_v5 = vld [vmem:[%s252_s26 + $0x28] sm:$0xff]   ;;  %v1750_v7 = vld [vmem:[%s252_s26 + $0x30] sm:$0xff]   ;;  %s1785_s23 = smov 72  }
  0x13   : > { %1695 = vmatprep.mubr.msk.bf16.mxu1 %vm357_vm0, %v1745_v3  ;;  %1688 = vmatmul.mubr.msk.bf16.vlgmr.msra.gmra.mrb[0].mxu0 %vm357_vm0, %v1746_v4  ;;  %v1749_v8 = vld [vmem:[%s252_s26 + $0x18] sm:$0xff]  }
  0x14   : > { %1696 = vmatmul.mubr.msk.bf16.vlgmr.msra.gmra.mrb[0].mxu1 %vm357_vm0, %v1747_v5  ;;  %1691 = vmatprep.mubr.msk.bf16.mxu0 %vm357_vm0, %v1748_v6  ;;  %v1751_v9 = vld [vmem:[%s252_s26 + $0x38] sm:$0xff]  }
  0x15   : > { %1699 = vmatprep.mubr.msk.bf16.mxu1 %vm357_vm0, %v1750_v7 }
  0x1b   : > { %1692 = vmatmul.mubr.msk.bf16.gmra.mrb[4].mxu0 %vm357_vm0, %v1749_v8 }
  0x1c   : > { %1700 = vmatmul.mubr.msk.bf16.gmra.mrb[4].mxu1 %vm357_vm0, %v1751_v9 }
  0xe6   : > { %v1689_v10 = vpop.f32.mrb[0].mxu0 }
  0xe7   : > { %v1855_v11 = vpack.c.bf16 %v1689_v10, %v1689_v10  ;;  %v1697_v12 = vpop.f32.mrb[0].mxu1  ;;  %v416_v13 = vpop.f32.mrb[1].mxu0 }
  0xe8   : > { %v1857_v14 = vpack.c.bf16 %v1697_v12, %v1697_v12  ;;  %v1859_v15 = vpack.c.bf16 %v416_v13, %v416_v13  ;;  %v448_v16 = vpop.f32.mrb[1].mxu1  ;;  %v1690_v17 = vpop.f32.mrb[2].mxu0 }
  0xe9   : > { %546 = vst.msk [vmem:[%s1853_s30 + $0x8] sm:$0xf] %vm543_vm1, %v1855_v11  ;;  %v1864_v18 = vpack.c.bf16 %v448_v16, %v448_v16  ;;  %v1866_v19 = vpack.c.bf16 %v1690_v17, %v1690_v17  ;;  %v1698_v20 = vpop.f32.mrb[2].mxu1  ;;  %564 = vrot.lane.b32.xlu1 %v1855_v11, %s1776_s5  ;;  %v419_v21 = vpop.f32.mrb[3].mxu0 }
  0xea   : > { %554 = vst.msk [vmem:[%s1853_s30 + $0x28] sm:$0xf] %vm543_vm1, %v1857_v14  ;;  %544 = vst.msk [vmem:[%s1853_s30] sm:$0xf] %vm543_vm1, %v1859_v15  ;;  %v1876_v22 = vpack.c.bf16 %v1698_v20, %v1698_v20  ;;  %580 = vrot.lane.b32.xlu0 %v1857_v14, %s1776_s5  ;;  %v451_v23 = vpop.f32.mrb[3].mxu1  ;;  %v1880_v24 = vpack.c.bf16 %v419_v21, %v419_v21 }
  0xeb   : > { %552 = vst.msk [vmem:[%s1853_s30 + $0x20] sm:$0xf] %vm543_vm1, %v1864_v18  ;;  %547 = vst.msk [vmem:[%s1853_s30 + $0xc] sm:$0xf] %vm543_vm1, %v1866_v19  ;;  %v1888_v25 = vpack.c.bf16 %v451_v23, %v451_v23 }
  0xec   : > { %555 = vst.msk [vmem:[%s1853_s30 + $0x2c] sm:$0xf] %vm543_vm1, %v1876_v22  ;;  %545 = vst.msk [vmem:[%s1853_s30 + $0x4] sm:$0xf] %vm543_vm1, %v1880_v24 }
  0xed   : > { %553 = vst.msk [vmem:[%s1853_s30 + $0x24] sm:$0xf] %vm543_vm1, %v1888_v25  ;;  %566 = vrot.lane.b32.xlu1 %v1866_v19, %s1776_s5 }
  0xee   : > { %628 = vrot.lane.b32.xlu0 %v1855_v11, %s1777_s6  ;;  %v1693_v26 = vpop.f32.mrb[4].mxu0 }
  0xef   : > { %v1903_v27 = vpack.c.bf16 %v1693_v26, %v1693_v26  ;;  %v432_v28 = vpop.f32.mrb[5].mxu0  ;;  %v1701_v29 = vpop.f32.mrb[4].mxu1 }
  0xf0   : > { %v1905_v30 = vpack.c.bf16 %v432_v28, %v432_v28  ;;  %v1694_v31 = vpop.f32.mrb[6].mxu0  ;;  %v1907_v32 = vpack.c.bf16 %v1701_v29, %v1701_v29  ;;  %v464_v33 = vpop.f32.mrb[5].mxu1 }
  0xf1   : > { %582 = vrot.lane.b32.xlu1 %v1876_v22, %s1776_s5  ;;  %550 = vst.msk [vmem:[%s1853_s30 + $0x18] sm:$0xf] %vm543_vm1, %v1903_v27  ;;  %v1914_v34 = vpack.c.bf16 %v1694_v31, %v1694_v31  ;;  %v435_v35 = vpop.f32.mrb[7].mxu0  ;;  %v1916_v36 = vpack.c.bf16 %v464_v33, %v464_v33  ;;  %v1702_v37 = vpop.f32.mrb[6].mxu1 }
  0xf2   : > { %644 = vrot.lane.b32.xlu0 %v1857_v14, %s1777_s6  ;;  %548 = vst.msk [vmem:[%s1853_s30 + $0x10] sm:$0xf] %vm543_vm1, %v1905_v30  ;;  %v1923_v38 = vpack.c.bf16 %v435_v35, %v435_v35  ;;  %558 = vst.msk [vmem:[%s1853_s30 + $0x38] sm:$0xf] %vm543_vm1, %v1907_v32  ;;  %v1928_v39 = vpack.c.bf16 %v1702_v37, %v1702_v37  ;;  %v467_v40 = vpop.f32.mrb[7].mxu1 }
  0xf3   : > { %551 = vst.msk [vmem:[%s1853_s30 + $0x1c] sm:$0xf] %vm543_vm1, %v1914_v34  ;;  %556 = vst.msk [vmem:[%s1853_s30 + $0x30] sm:$0xf] %vm543_vm1, %v1916_v36  ;;  %v1936_v41 = vpack.c.bf16 %v467_v40, %v467_v40 }
  0xf4   : > { %549 = vst.msk [vmem:[%s1853_s30 + $0x14] sm:$0xf] %vm543_vm1, %v1923_v38  ;;  %559 = vst.msk [vmem:[%s1853_s30 + $0x3c] sm:$0xf] %vm543_vm1, %v1928_v39 }
  0xf5   : > { %630 = vrot.lane.b32.xlu1 %v1866_v19, %s1777_s6  ;;  %557 = vst.msk [vmem:[%s1853_s30 + $0x34] sm:$0xf] %vm543_vm1, %v1936_v41 }
  0xf6   : > { %692 = vrot.lane.b32.xlu0 %v1855_v11, %s1778_s7 }
  0xf9   : > { %646 = vrot.lane.b32.xlu1 %v1876_v22, %s1777_s6 }
  0xfa   : > { %708 = vrot.lane.b32.xlu0 %v1857_v14, %s1778_s7 }
  0xfd   : > { %694 = vrot.lane.b32.xlu1 %v1866_v19, %s1778_s7 }
  0xfe   : > { %757 = vrot.lane.b32.xlu0 %v1855_v11, %s1779_s8 }
 0x101   : > { %710 = vrot.lane.b32.xlu1 %v1876_v22, %s1778_s7 }
 0x102   : > { %773 = vrot.lane.b32.xlu0 %v1857_v14, %s1779_s8 }
 0x105   : > { %759 = vrot.lane.b32.xlu1 %v1866_v19, %s1779_s8 }
 0x106   : > { %822 = vrot.lane.b32.xlu0 %v1855_v11, %s1780_s9 }
 0x109   : > { %775 = vrot.lane.b32.xlu1 %v1876_v22, %s1779_s8 }
 0x10a   : > { %838 = vrot.lane.b32.xlu0 %v1857_v14, %s1780_s9 }
 0x10d   : > { %824 = vrot.lane.b32.xlu1 %v1866_v19, %s1780_s9 }
 0x10e   : > { %887 = vrot.lane.b32.xlu0 %v1855_v11, %s1781_s10 }
 0x111   : > { %840 = vrot.lane.b32.xlu1 %v1876_v22, %s1780_s9 }
 0x112   : > { %903 = vrot.lane.b32.xlu0 %v1857_v14, %s1781_s10 }
 0x115   : > { %889 = vrot.lane.b32.xlu1 %v1866_v19, %s1781_s10 }
 0x116   : > { %952 = vrot.lane.b32.xlu0 %v1855_v11, %s1782_s11 }
 0x119   : > { %905 = vrot.lane.b32.xlu1 %v1876_v22, %s1781_s10 }
 0x11a   : > { %968 = vrot.lane.b32.xlu0 %v1857_v14, %s1782_s11 }
 0x11d   : > { %954 = vrot.lane.b32.xlu1 %v1866_v19, %s1782_s11 }
 0x11e   : > { %1017 = vrot.lane.b32.xlu0 %v1855_v11, %s1783_s12 }
 0x121   : > { %970 = vrot.lane.b32.xlu1 %v1876_v22, %s1782_s11 }
 0x122   : > { %560 = vrot.lane.b32.xlu0 %v1859_v15, %s1776_s5 }
 0x125   : > { %1019 = vrot.lane.b32.xlu1 %v1866_v19, %s1783_s12 }
 0x126   : > { %576 = vrot.lane.b32.xlu0 %v1864_v18, %s1776_s5 }
 0x129   : > { %578 = vrot.lane.b32.xlu1 %v1888_v25, %s1776_s5 }
 0x12a   : > { %624 = vrot.lane.b32.xlu0 %v1859_v15, %s1777_s6 }
 0x12d   : > { %626 = vrot.lane.b32.xlu1 %v1880_v24, %s1777_s6 }
 0x12e   : > { %640 = vrot.lane.b32.xlu0 %v1864_v18, %s1777_s6 }
 0x131   : > { %642 = vrot.lane.b32.xlu1 %v1888_v25, %s1777_s6 }
 0x132   : > { %688 = vrot.lane.b32.xlu0 %v1859_v15, %s1778_s7 }
 0x135   : > { %690 = vrot.lane.b32.xlu1 %v1880_v24, %s1778_s7 }
 0x136   : > { %704 = vrot.lane.b32.xlu0 %v1864_v18, %s1778_s7 }
 0x139   : > { %706 = vrot.lane.b32.xlu1 %v1888_v25, %s1778_s7 }
 0x13a   : > { %753 = vrot.lane.b32.xlu0 %v1859_v15, %s1779_s8 }
 0x13d   : > { %755 = vrot.lane.b32.xlu1 %v1880_v24, %s1779_s8 }
 0x13e   : > { %769 = vrot.lane.b32.xlu0 %v1864_v18, %s1779_s8 }
 0x141   : > { %771 = vrot.lane.b32.xlu1 %v1888_v25, %s1779_s8 }
 0x142   : > { %818 = vrot.lane.b32.xlu0 %v1859_v15, %s1780_s9 }
 0x145   : > { %820 = vrot.lane.b32.xlu1 %v1880_v24, %s1780_s9 }
 0x146   : > { %834 = vrot.lane.b32.xlu0 %v1864_v18, %s1780_s9 }
 0x149   : > { %836 = vrot.lane.b32.xlu1 %v1888_v25, %s1780_s9 }
 0x14a   : > { %883 = vrot.lane.b32.xlu0 %v1859_v15, %s1781_s10 }
 0x14d   : > { %885 = vrot.lane.b32.xlu1 %v1880_v24, %s1781_s10 }
 0x14e   : > { %899 = vrot.lane.b32.xlu0 %v1864_v18, %s1781_s10 }
 0x151   : > { %901 = vrot.lane.b32.xlu1 %v1888_v25, %s1781_s10 }
 0x152   : > { %948 = vrot.lane.b32.xlu0 %v1859_v15, %s1782_s11 }
 0x155   : > { %950 = vrot.lane.b32.xlu1 %v1880_v24, %s1782_s11 }
 0x156   : > { %964 = vrot.lane.b32.xlu0 %v1864_v18, %s1782_s11 }
 0x159   : > { %966 = vrot.lane.b32.xlu1 %v1888_v25, %s1782_s11 }
 0x15a   : > { %1013 = vrot.lane.b32.xlu0 %v1859_v15, %s1783_s12 }
 0x15b   : > { %v565_v42 = vpop.permute.xlu1 %564 }
 0x15c   : > { %v581_v43 = vpop.permute.xlu0 %580  ;;  %610 = vst.msk [vmem:[%s2053_s15 + $0x8] sm:$0xf] %vm543_vm1, %v565_v42 }
 0x15d   : > { %618 = vst.msk [vmem:[%s2053_s15 + $0x28] sm:$0xf] %vm543_vm1, %v581_v43  ;;  %1015 = vrot.lane.b32.xlu1 %v1880_v24, %s1783_s12 }
 0x15e   : > { %562 = vrot.lane.b32.xlu0 %v1880_v24, %s1776_s5 }
 0x15f   : > { %v567_v44 = vpop.permute.xlu1 %566 }
 0x160   : > { %v629_v45 = vpop.permute.xlu0 %628  ;;  %611 = vst.msk [vmem:[%s2053_s15 + $0xc] sm:$0xf] %vm543_vm1, %v567_v44 }
 0x161   : > { %674 = vst.msk [vmem:[%s2069_s21 + $0x8] sm:$0xf] %vm543_vm1, %v629_v45  ;;  %574 = vrot.lane.b32.xlu1 %v1914_v34, %s1776_s5 }
 0x162   : > { %572 = vrot.lane.b32.xlu0 %v1903_v27, %s1776_s5 }
 0x163   : > { %v583_v46 = vpop.permute.xlu1 %582 }
 0x164   : > { %v645_v47 = vpop.permute.xlu0 %644  ;;  %619 = vst.msk [vmem:[%s2053_s15 + $0x2c] sm:$0xf] %vm543_vm1, %v583_v46 }
 0x165   : > { %682 = vst.msk [vmem:[%s2069_s21 + $0x28] sm:$0xf] %vm543_vm1, %v645_v47  ;;  %590 = vrot.lane.b32.xlu1 %v1928_v39, %s1776_s5 }
 0x166   : > { %588 = vrot.lane.b32.xlu0 %v1907_v32, %s1776_s5 }
 0x167   : > { %v631_v48 = vpop.permute.xlu1 %630 }
 0x168   : > { %v693_v49 = vpop.permute.xlu0 %692  ;;  %675 = vst.msk [vmem:[%s2069_s21 + $0xc] sm:$0xf] %vm543_vm1, %v631_v48 }
 0x169   : > { %1509 = vst.msk [vmem:[%s1853_s30 + $0x48] sm:$0xf] %vm543_vm1, %v693_v49  ;;  %638 = vrot.lane.b32.xlu1 %v1914_v34, %s1777_s6 }
 0x16a   : > { %636 = vrot.lane.b32.xlu0 %v1903_v27, %s1777_s6 }
 0x16b   : > { %v647_v50 = vpop.permute.xlu1 %646 }
 0x16c   : > { %v709_v51 = vpop.permute.xlu0 %708  ;;  %683 = vst.msk [vmem:[%s2069_s21 + $0x2c] sm:$0xf] %vm543_vm1, %v647_v50 }
 0x16d   : > { %1517 = vst.msk [vmem:[%s1853_s30 + $0x68] sm:$0xf] %vm543_vm1, %v709_v51  ;;  %654 = vrot.lane.b32.xlu1 %v1928_v39, %s1777_s6 }
 0x16e   : > { %652 = vrot.lane.b32.xlu0 %v1907_v32, %s1777_s6 }
 0x16f   : > { %v695_v52 = vpop.permute.xlu1 %694 }
 0x170   : > { %v758_v53 = vpop.permute.xlu0 %757  ;;  %1510 = vst.msk [vmem:[%s1853_s30 + $0x4c] sm:$0xf] %vm543_vm1, %v695_v52 }
 0x171   : > { %1525 = vst.msk [vmem:[%s2053_s15 + $0x48] sm:$0xf] %vm543_vm1, %v758_v53  ;;  %702 = vrot.lane.b32.xlu1 %v1914_v34, %s1778_s7 }
 0x172   : > { %700 = vrot.lane.b32.xlu0 %v1903_v27, %s1778_s7 }
 0x173   : > { %v711_v54 = vpop.permute.xlu1 %710 }
 0x174   : > { %v774_v55 = vpop.permute.xlu0 %773  ;;  %1518 = vst.msk [vmem:[%s1853_s30 + $0x6c] sm:$0xf] %vm543_vm1, %v711_v54 }
 0x175   : > { %1533 = vst.msk [vmem:[%s2053_s15 + $0x68] sm:$0xf] %vm543_vm1, %v774_v55  ;;  %718 = vrot.lane.b32.xlu1 %v1928_v39, %s1778_s7 }
 0x176   : > { %716 = vrot.lane.b32.xlu0 %v1907_v32, %s1778_s7 }
 0x177   : > { %v760_v56 = vpop.permute.xlu1 %759 }
 0x178   : > { %v823_v57 = vpop.permute.xlu0 %822  ;;  %1526 = vst.msk [vmem:[%s2053_s15 + $0x4c] sm:$0xf] %vm543_vm1, %v760_v56 }
 0x179   : > { %1541 = vst.msk [vmem:[%s2069_s21 + $0x48] sm:$0xf] %vm543_vm1, %v823_v57  ;;  %767 = vrot.lane.b32.xlu1 %v1914_v34, %s1779_s8 }
 0x17a   : > { %765 = vrot.lane.b32.xlu0 %v1903_v27, %s1779_s8 }
 0x17b   : > { %v776_v58 = vpop.permute.xlu1 %775 }
 0x17c   : > { %v839_v59 = vpop.permute.xlu0 %838  ;;  %1534 = vst.msk [vmem:[%s2053_s15 + $0x6c] sm:$0xf] %vm543_vm1, %v776_v58 }
 0x17d   : > { %1549 = vst.msk [vmem:[%s2069_s21 + $0x68] sm:$0xf] %vm543_vm1, %v839_v59  ;;  %783 = vrot.lane.b32.xlu1 %v1928_v39, %s1779_s8 }
 0x17e   : > { %781 = vrot.lane.b32.xlu0 %v1907_v32, %s1779_s8 }
 0x17f   : > { %v825_v60 = vpop.permute.xlu1 %824 }
 0x180   : > { %v888_v61 = vpop.permute.xlu0 %887  ;;  %1542 = vst.msk [vmem:[%s2069_s21 + $0x4c] sm:$0xf] %vm543_vm1, %v825_v60 }
 0x181   : > { %1557 = vst.msk [vmem:[%s1853_s30 + $0x88] sm:$0xf] %vm543_vm1, %v888_v61  ;;  %832 = vrot.lane.b32.xlu1 %v1914_v34, %s1780_s9 }
 0x182   : > { %830 = vrot.lane.b32.xlu0 %v1903_v27, %s1780_s9 }
 0x183   : > { %v841_v62 = vpop.permute.xlu1 %840 }
 0x184   : > { %v904_v63 = vpop.permute.xlu0 %903  ;;  %1550 = vst.msk [vmem:[%s2069_s21 + $0x6c] sm:$0xf] %vm543_vm1, %v841_v62 }
 0x185   : > { %1565 = vst.msk [vmem:[%s1853_s30 + $0xa8] sm:$0xf] %vm543_vm1, %v904_v63  ;;  %848 = vrot.lane.b32.xlu1 %v1928_v39, %s1780_s9 }
 0x186   : > { %846 = vrot.lane.b32.xlu0 %v1907_v32, %s1780_s9 }
 0x187   : > { %v890_v0 = vpop.permute.xlu1 %889 }
 0x188   : > { %v953_v1 = vpop.permute.xlu0 %952  ;;  %1558 = vst.msk [vmem:[%s1853_s30 + $0x8c] sm:$0xf] %vm543_vm1, %v890_v0 }
 0x189   : > { %1573 = vst.msk [vmem:[%s2053_s15 + $0x88] sm:$0xf] %vm543_vm1, %v953_v1  ;;  %897 = vrot.lane.b32.xlu1 %v1914_v34, %s1781_s10 }
 0x18a   : > { %895 = vrot.lane.b32.xlu0 %v1903_v27, %s1781_s10 }
 0x18b   : > { %v906_v2 = vpop.permute.xlu1 %905 }
 0x18c   : > { %v969_v3 = vpop.permute.xlu0 %968  ;;  %1566 = vst.msk [vmem:[%s1853_s30 + $0xac] sm:$0xf] %vm543_vm1, %v906_v2 }
 0x18d   : > { %1581 = vst.msk [vmem:[%s2053_s15 + $0xa8] sm:$0xf] %vm543_vm1, %v969_v3  ;;  %913 = vrot.lane.b32.xlu1 %v1928_v39, %s1781_s10 }
 0x18e   : > { %911 = vrot.lane.b32.xlu0 %v1907_v32, %s1781_s10 }
 0x18f   : > { %v955_v4 = vpop.permute.xlu1 %954 }
 0x190   : > { %v1018_v5 = vpop.permute.xlu0 %1017  ;;  %1574 = vst.msk [vmem:[%s2053_s15 + $0x8c] sm:$0xf] %vm543_vm1, %v955_v4 }
 0x191   : > { %1589 = vst.msk [vmem:[%s2069_s21 + $0x88] sm:$0xf] %vm543_vm1, %v1018_v5  ;;  %962 = vrot.lane.b32.xlu1 %v1914_v34, %s1782_s11 }
 0x192   : > { %960 = vrot.lane.b32.xlu0 %v1903_v27, %s1782_s11 }
 0x193   : > { %v971_v6 = vpop.permute.xlu1 %970 }
 0x194   : > { %v561_v7 = vpop.permute.xlu0 %560  ;;  %1582 = vst.msk [vmem:[%s2053_s15 + $0xac] sm:$0xf] %vm543_vm1, %v971_v6 }
 0x195   : > { %608 = vst.msk [vmem:[%s2053_s15] sm:$0xf] %vm543_vm1, %v561_v7  ;;  %978 = vrot.lane.b32.xlu1 %v1928_v39, %s1782_s11 }
 0x196   : > { %976 = vrot.lane.b32.xlu0 %v1907_v32, %s1782_s11 }
 0x197   : > { %v1020_v8 = vpop.permute.xlu1 %1019 }
 0x198   : > { %v577_v9 = vpop.permute.xlu0 %576  ;;  %1590 = vst.msk [vmem:[%s2069_s21 + $0x8c] sm:$0xf] %vm543_vm1, %v1020_v8 }
 0x199   : > { %616 = vst.msk [vmem:[%s2053_s15 + $0x20] sm:$0xf] %vm543_vm1, %v577_v9  ;;  %1027 = vrot.lane.b32.xlu1 %v1914_v34, %s1783_s12 }
 0x19a   : > { %568 = vrot.lane.b32.xlu0 %v1905_v30, %s1776_s5 }
 0x19b   : > { %v579_v10 = vpop.permute.xlu1 %578 }
 0x19c   : > { %v625_v12 = vpop.permute.xlu0 %624  ;;  %617 = vst.msk [vmem:[%s2053_s15 + $0x24] sm:$0xf] %vm543_vm1, %v579_v10 }
 0x19d   : > { %672 = vst.msk [vmem:[%s2069_s21] sm:$0xf] %vm543_vm1, %v625_v12  ;;  %570 = vrot.lane.b32.xlu1 %v1923_v38, %s1776_s5 }
 0x19e   : > { %584 = vrot.lane.b32.xlu0 %v1916_v36, %s1776_s5 }
 0x19f   : > { %v627_v13 = vpop.permute.xlu1 %626 }
 0x1a0   : > { %v641_v16 = vpop.permute.xlu0 %640  ;;  %673 = vst.msk [vmem:[%s2069_s21 + $0x4] sm:$0xf] %vm543_vm1, %v627_v13 }
 0x1a1   : > { %680 = vst.msk [vmem:[%s2069_s21 + $0x20] sm:$0xf] %vm543_vm1, %v641_v16  ;;  %586 = vrot.lane.b32.xlu1 %v1936_v41, %s1776_s5 }
 0x1a2   : > { %632 = vrot.lane.b32.xlu0 %v1905_v30, %s1777_s6 }
 0x1a3   : > { %v643_v17 = vpop.permute.xlu1 %642 }
 0x1a4   : > { %v689_v20 = vpop.permute.xlu0 %688  ;;  %681 = vst.msk [vmem:[%s2069_s21 + $0x24] sm:$0xf] %vm543_vm1, %v643_v17 }
 0x1a5   : > { %1507 = vst.msk [vmem:[%s1853_s30 + $0x40] sm:$0xf] %vm543_vm1, %v689_v20  ;;  %634 = vrot.lane.b32.xlu1 %v1923_v38, %s1777_s6 }
 0x1a6   : > { %648 = vrot.lane.b32.xlu0 %v1916_v36, %s1777_s6 }
 0x1a7   : > { %v691_v21 = vpop.permute.xlu1 %690 }
 0x1a8   : > { %v705_v23 = vpop.permute.xlu0 %704  ;;  %1508 = vst.msk [vmem:[%s1853_s30 + $0x44] sm:$0xf] %vm543_vm1, %v691_v21 }
 0x1a9   : > { %1515 = vst.msk [vmem:[%s1853_s30 + $0x60] sm:$0xf] %vm543_vm1, %v705_v23  ;;  %650 = vrot.lane.b32.xlu1 %v1936_v41, %s1777_s6 }
 0x1aa   : > { %696 = vrot.lane.b32.xlu0 %v1905_v30, %s1778_s7 }
 0x1ab   : > { %v707_v26 = vpop.permute.xlu1 %706 }
 0x1ac   : > { %v754_v28 = vpop.permute.xlu0 %753  ;;  %1516 = vst.msk [vmem:[%s1853_s30 + $0x64] sm:$0xf] %vm543_vm1, %v707_v26 }
 0x1ad   : > { %1523 = vst.msk [vmem:[%s2053_s15 + $0x40] sm:$0xf] %vm543_vm1, %v754_v28  ;;  %698 = vrot.lane.b32.xlu1 %v1923_v38, %s1778_s7 }
 0x1ae   : > { %712 = vrot.lane.b32.xlu0 %v1916_v36, %s1778_s7 }
 0x1af   : > { %v756_v29 = vpop.permute.xlu1 %755 }
 0x1b0   : > { %v770_v31 = vpop.permute.xlu0 %769  ;;  %1524 = vst.msk [vmem:[%s2053_s15 + $0x44] sm:$0xf] %vm543_vm1, %v756_v29 }
 0x1b1   : > { %1531 = vst.msk [vmem:[%s2053_s15 + $0x60] sm:$0xf] %vm543_vm1, %v770_v31  ;;  %714 = vrot.lane.b32.xlu1 %v1936_v41, %s1778_s7 }
 0x1b2   : > { %761 = vrot.lane.b32.xlu0 %v1905_v30, %s1779_s8 }
 0x1b3   : > { %v772_v33 = vpop.permute.xlu1 %771 }
 0x1b4   : > { %v819_v35 = vpop.permute.xlu0 %818  ;;  %1532 = vst.msk [vmem:[%s2053_s15 + $0x64] sm:$0xf] %vm543_vm1, %v772_v33 }
 0x1b5   : > { %1539 = vst.msk [vmem:[%s2069_s21 + $0x40] sm:$0xf] %vm543_vm1, %v819_v35  ;;  %763 = vrot.lane.b32.xlu1 %v1923_v38, %s1779_s8 }
 0x1b6   : > { %777 = vrot.lane.b32.xlu0 %v1916_v36, %s1779_s8 }
 0x1b7   : > { %v821_v37 = vpop.permute.xlu1 %820 }
 0x1b8   : > { %v835_v40 = vpop.permute.xlu0 %834  ;;  %1540 = vst.msk [vmem:[%s2069_s21 + $0x44] sm:$0xf] %vm543_vm1, %v821_v37 }
 0x1b9   : > { %1547 = vst.msk [vmem:[%s2069_s21 + $0x60] sm:$0xf] %vm543_vm1, %v835_v40  ;;  %779 = vrot.lane.b32.xlu1 %v1936_v41, %s1779_s8 }
 0x1ba   : > { %826 = vrot.lane.b32.xlu0 %v1905_v30, %s1780_s9 }
 0x1bb   : > { %v837_v42 = vpop.permute.xlu1 %836 }
 0x1bc   : > { %v884_v43 = vpop.permute.xlu0 %883  ;;  %1548 = vst.msk [vmem:[%s2069_s21 + $0x64] sm:$0xf] %vm543_vm1, %v837_v42 }
 0x1bd   : > { %1555 = vst.msk [vmem:[%s1853_s30 + $0x80] sm:$0xf] %vm543_vm1, %v884_v43  ;;  %828 = vrot.lane.b32.xlu1 %v1923_v38, %s1780_s9 }
 0x1be   : > { %842 = vrot.lane.b32.xlu0 %v1916_v36, %s1780_s9 }
 0x1bf   : > { %v886_v44 = vpop.permute.xlu1 %885 }
 0x1c0   : > { %v900_v45 = vpop.permute.xlu0 %899  ;;  %1556 = vst.msk [vmem:[%s1853_s30 + $0x84] sm:$0xf] %vm543_vm1, %v886_v44 }
 0x1c1   : > { %1563 = vst.msk [vmem:[%s1853_s30 + $0xa0] sm:$0xf] %vm543_vm1, %v900_v45  ;;  %844 = vrot.lane.b32.xlu1 %v1936_v41, %s1780_s9 }
 0x1c2   : > { %891 = vrot.lane.b32.xlu0 %v1905_v30, %s1781_s10 }
 0x1c3   : > { %v902_v46 = vpop.permute.xlu1 %901 }
 0x1c4   : > { %v949_v47 = vpop.permute.xlu0 %948  ;;  %1564 = vst.msk [vmem:[%s1853_s30 + $0xa4] sm:$0xf] %vm543_vm1, %v902_v46 }
 0x1c5   : > { %1571 = vst.msk [vmem:[%s2053_s15 + $0x80] sm:$0xf] %vm543_vm1, %v949_v47  ;;  %893 = vrot.lane.b32.xlu1 %v1923_v38, %s1781_s10 }
 0x1c6   : > { %907 = vrot.lane.b32.xlu0 %v1916_v36, %s1781_s10 }
 0x1c7   : > { %v951_v48 = vpop.permute.xlu1 %950 }
 0x1c8   : > { %v965_v49 = vpop.permute.xlu0 %964  ;;  %1572 = vst.msk [vmem:[%s2053_s15 + $0x84] sm:$0xf] %vm543_vm1, %v951_v48 }
 0x1c9   : > { %1579 = vst.msk [vmem:[%s2053_s15 + $0xa0] sm:$0xf] %vm543_vm1, %v965_v49  ;;  %909 = vrot.lane.b32.xlu1 %v1936_v41, %s1781_s10 }
 0x1ca   : > { %956 = vrot.lane.b32.xlu0 %v1905_v30, %s1782_s11 }
 0x1cb   : > { %v967_v50 = vpop.permute.xlu1 %966 }
 0x1cc   : > { %v1014_v51 = vpop.permute.xlu0 %1013  ;;  %1580 = vst.msk [vmem:[%s2053_s15 + $0xa4] sm:$0xf] %vm543_vm1, %v967_v50 }
 0x1cd   : > { %1587 = vst.msk [vmem:[%s2069_s21 + $0x80] sm:$0xf] %vm543_vm1, %v1014_v51  ;;  %958 = vrot.lane.b32.xlu1 %v1923_v38, %s1782_s11 }
 0x1ce   : > { %972 = vrot.lane.b32.xlu0 %v1916_v36, %s1782_s11 }
 0x1cf   : > { %v1016_v52 = vpop.permute.xlu1 %1015 }
 0x1d0   : > { %1588 = vst.msk [vmem:[%s2069_s21 + $0x84] sm:$0xf] %vm543_vm1, %v1016_v52  ;;  %v563_v53 = vpop.permute.xlu0 %562 }
 0x1d1   : > { %609 = vst.msk [vmem:[%s2053_s15 + $0x4] sm:$0xf] %vm543_vm1, %v563_v53  ;;  %974 = vrot.lane.b32.xlu1 %v1936_v41, %s1782_s11 }
 0x1d2   : > { %1021 = vrot.lane.b32.xlu0 %v1905_v30, %s1783_s12 }
 0x1d3   : > { %v575_v54 = vpop.permute.xlu1 %574 }
 0x1d4   : > { %v573_v55 = vpop.permute.xlu0 %572  ;;  %615 = vst.msk [vmem:[%s2053_s15 + $0x1c] sm:$0xf] %vm543_vm1, %v575_v54 }
 0x1d5   : > { %614 = vst.msk [vmem:[%s2053_s15 + $0x18] sm:$0xf] %vm543_vm1, %v573_v55  ;;  %1023 = vrot.lane.b32.xlu1 %v1923_v38, %s1783_s12 }
 0x1d6   : > { %1025 = vrot.lane.b32.xlu0 %v1903_v27, %s1783_s12 }
 0x1d7   : > { %v591_v56 = vpop.permute.xlu1 %590 }
 0x1d8   : > { %v589_v57 = vpop.permute.xlu0 %588  ;;  %623 = vst.msk [vmem:[%s2053_s15 + $0x3c] sm:$0xf] %vm543_vm1, %v591_v56 }
 0x1d9   : > { %622 = vst.msk [vmem:[%s2053_s15 + $0x38] sm:$0xf] %vm543_vm1, %v589_v57  ;;  %1031 = vrot.lane.b32.xlu1 %v1888_v25, %s1783_s12 }
 0x1da   : > { %1029 = vrot.lane.b32.xlu0 %v1864_v18, %s1783_s12 }
 0x1db   : > { %v639_v58 = vpop.permute.xlu1 %638 }
 0x1dc   : > { %v637_v59 = vpop.permute.xlu0 %636  ;;  %679 = vst.msk [vmem:[%s2069_s21 + $0x1c] sm:$0xf] %vm543_vm1, %v639_v58 }
 0x1dd   : > { %678 = vst.msk [vmem:[%s2069_s21 + $0x18] sm:$0xf] %vm543_vm1, %v637_v59  ;;  %1035 = vrot.lane.b32.xlu1 %v1876_v22, %s1783_s12 }
 0x1de   : > { %1033 = vrot.lane.b32.xlu0 %v1857_v14, %s1783_s12 }
 0x1df   : > { %v655_v60 = vpop.permute.xlu1 %654 }
 0x1e0   : > { %v653_v61 = vpop.permute.xlu0 %652  ;;  %687 = vst.msk [vmem:[%s2069_s21 + $0x3c] sm:$0xf] %vm543_vm1, %v655_v60 }
 0x1e1   : > { %686 = vst.msk [vmem:[%s2069_s21 + $0x38] sm:$0xf] %vm543_vm1, %v653_v61  ;;  %1039 = vrot.lane.b32.xlu1 %v1936_v41, %s1783_s12 }
 0x1e2   : > { %1037 = vrot.lane.b32.xlu0 %v1916_v36, %s1783_s12 }
 0x1e3   : > { %v703_v62 = vpop.permute.xlu1 %702 }
 0x1e4   : > { %v701_v63 = vpop.permute.xlu0 %700  ;;  %1514 = vst.msk [vmem:[%s1853_s30 + $0x5c] sm:$0xf] %vm543_vm1, %v703_v62 }
 0x1e5   : > { %1513 = vst.msk [vmem:[%s1853_s30 + $0x58] sm:$0xf] %vm543_vm1, %v701_v63  ;;  %1043 = vrot.lane.b32.xlu1 %v1928_v39, %s1783_s12 }
 0x1e6   : > { %1041 = vrot.lane.b32.xlu0 %v1907_v32, %s1783_s12 }
 0x1e7   : > { %v719_v0 = vpop.permute.xlu1 %718 }
 0x1e8   : > { %v717_v1 = vpop.permute.xlu0 %716  ;;  %1522 = vst.msk [vmem:[%s1853_s30 + $0x7c] sm:$0xf] %vm543_vm1, %v719_v0 }
 0x1e9   : > { %1521 = vst.msk [vmem:[%s1853_s30 + $0x78] sm:$0xf] %vm543_vm1, %v717_v1  ;;  %1080 = vrot.lane.b32.xlu1 %v1880_v24, %s1784_s22 }
 0x1ea   : > { %1078 = vrot.lane.b32.xlu0 %v1859_v15, %s1784_s22 }
 0x1eb   : > { %v768_v2 = vpop.permute.xlu1 %767 }
 0x1ec   : > { %v766_v3 = vpop.permute.xlu0 %765  ;;  %1530 = vst.msk [vmem:[%s2053_s15 + $0x5c] sm:$0xf] %vm543_vm1, %v768_v2 }
 0x1ed   : > { %1529 = vst.msk [vmem:[%s2053_s15 + $0x58] sm:$0xf] %vm543_vm1, %v766_v3  ;;  %1084 = vrot.lane.b32.xlu1 %v1866_v19, %s1784_s22 }
 0x1ee   : > { %1082 = vrot.lane.b32.xlu0 %v1855_v11, %s1784_s22 }
 0x1ef   : > { %v784_v4 = vpop.permute.xlu1 %783 }
 0x1f0   : > { %v782_v5 = vpop.permute.xlu0 %781  ;;  %1538 = vst.msk [vmem:[%s2053_s15 + $0x7c] sm:$0xf] %vm543_vm1, %v784_v4 }
 0x1f1   : > { %1537 = vst.msk [vmem:[%s2053_s15 + $0x78] sm:$0xf] %vm543_vm1, %v782_v5  ;;  %1088 = vrot.lane.b32.xlu1 %v1923_v38, %s1784_s22 }
 0x1f2   : > { %1086 = vrot.lane.b32.xlu0 %v1905_v30, %s1784_s22 }
 0x1f3   : > { %v833_v6 = vpop.permute.xlu1 %832 }
 0x1f4   : > { %v831_v7 = vpop.permute.xlu0 %830  ;;  %1546 = vst.msk [vmem:[%s2069_s21 + $0x5c] sm:$0xf] %vm543_vm1, %v833_v6 }
 0x1f5   : > { %1545 = vst.msk [vmem:[%s2069_s21 + $0x58] sm:$0xf] %vm543_vm1, %v831_v7  ;;  %1092 = vrot.lane.b32.xlu1 %v1914_v34, %s1784_s22 }
 0x1f6   : > { %1090 = vrot.lane.b32.xlu0 %v1903_v27, %s1784_s22 }
 0x1f7   : > { %v849_v8 = vpop.permute.xlu1 %848 }
 0x1f8   : > { %v847_v9 = vpop.permute.xlu0 %846  ;;  %1554 = vst.msk [vmem:[%s2069_s21 + $0x7c] sm:$0xf] %vm543_vm1, %v849_v8 }
 0x1f9   : > { %1553 = vst.msk [vmem:[%s2069_s21 + $0x78] sm:$0xf] %vm543_vm1, %v847_v9  ;;  %1096 = vrot.lane.b32.xlu1 %v1888_v25, %s1784_s22 }
 0x1fa   : > { %1094 = vrot.lane.b32.xlu0 %v1864_v18, %s1784_s22 }
 0x1fb   : > { %v898_v10 = vpop.permute.xlu1 %897 }
 0x1fc   : > { %v896_v12 = vpop.permute.xlu0 %895  ;;  %1562 = vst.msk [vmem:[%s1853_s30 + $0x9c] sm:$0xf] %vm543_vm1, %v898_v10 }
 0x1fd   : > { %1561 = vst.msk [vmem:[%s1853_s30 + $0x98] sm:$0xf] %vm543_vm1, %v896_v12  ;;  %1100 = vrot.lane.b32.xlu1 %v1876_v22, %s1784_s22 }
 0x1fe   : > { %1098 = vrot.lane.b32.xlu0 %v1857_v14, %s1784_s22 }
 0x1ff   : > { %v914_v13 = vpop.permute.xlu1 %913 }
 0x200   : > { %v912_v16 = vpop.permute.xlu0 %911  ;;  %1570 = vst.msk [vmem:[%s1853_s30 + $0xbc] sm:$0xf] %vm543_vm1, %v914_v13 }
 0x201   : > { %1569 = vst.msk [vmem:[%s1853_s30 + $0xb8] sm:$0xf] %vm543_vm1, %v912_v16  ;;  %1104 = vrot.lane.b32.xlu1 %v1936_v41, %s1784_s22 }
 0x202   : > { %1102 = vrot.lane.b32.xlu0 %v1916_v36, %s1784_s22 }
 0x203   : > { %v963_v17 = vpop.permute.xlu1 %962 }
 0x204   : > { %v961_v20 = vpop.permute.xlu0 %960  ;;  %1578 = vst.msk [vmem:[%s2053_s15 + $0x9c] sm:$0xf] %vm543_vm1, %v963_v17 }
 0x205   : > { %1577 = vst.msk [vmem:[%s2053_s15 + $0x98] sm:$0xf] %vm543_vm1, %v961_v20  ;;  %1108 = vrot.lane.b32.xlu1 %v1928_v39, %s1784_s22 }
 0x206   : > { %1106 = vrot.lane.b32.xlu0 %v1907_v32, %s1784_s22 }
 0x207   : > { %v979_v21 = vpop.permute.xlu1 %978 }
 0x208   : > { %v977_v23 = vpop.permute.xlu0 %976  ;;  %1586 = vst.msk [vmem:[%s2053_s15 + $0xbc] sm:$0xf] %vm543_vm1, %v979_v21 }
 0x209   : > { %1585 = vst.msk [vmem:[%s2053_s15 + $0xb8] sm:$0xf] %vm543_vm1, %v977_v23  ;;  %1145 = vrot.lane.b32.xlu1 %v1880_v24, %s1785_s23 }
 0x20a   : > { %1143 = vrot.lane.b32.xlu0 %v1859_v15, %s1785_s23 }
 0x20b   : > { %v1028_v26 = vpop.permute.xlu1 %1027 }
 0x20c   : > { %v569_v28 = vpop.permute.xlu0 %568  ;;  %1594 = vst.msk [vmem:[%s2069_s21 + $0x9c] sm:$0xf] %vm543_vm1, %v1028_v26 }
 0x20d   : > { %612 = vst.msk [vmem:[%s2053_s15 + $0x10] sm:$0xf] %vm543_vm1, %v569_v28  ;;  %1149 = vrot.lane.b32.xlu1 %v1866_v19, %s1785_s23 }
 0x20e   : > { %1147 = vrot.lane.b32.xlu0 %v1855_v11, %s1785_s23 }
 0x20f   : > { %v571_v29 = vpop.permute.xlu1 %570 }
 0x210   : > { %v585_v31 = vpop.permute.xlu0 %584  ;;  %613 = vst.msk [vmem:[%s2053_s15 + $0x14] sm:$0xf] %vm543_vm1, %v571_v29 }
 0x211   : > { %620 = vst.msk [vmem:[%s2053_s15 + $0x30] sm:$0xf] %vm543_vm1, %v585_v31  ;;  %1153 = vrot.lane.b32.xlu1 %v1923_v38, %s1785_s23 }
 0x212   : > { %1151 = vrot.lane.b32.xlu0 %v1905_v30, %s1785_s23 }
 0x213   : > { %v587_v33 = vpop.permute.xlu1 %586 }
 0x214   : > { %v633_v35 = vpop.permute.xlu0 %632  ;;  %621 = vst.msk [vmem:[%s2053_s15 + $0x34] sm:$0xf] %vm543_vm1, %v587_v33 }
 0x215   : > { %676 = vst.msk [vmem:[%s2069_s21 + $0x10] sm:$0xf] %vm543_vm1, %v633_v35  ;;  %1157 = vrot.lane.b32.xlu1 %v1914_v34, %s1785_s23 }
 0x216   : > { %1155 = vrot.lane.b32.xlu0 %v1903_v27, %s1785_s23 }
 0x217   : > { %v635_v37 = vpop.permute.xlu1 %634 }
 0x218   : > { %v649_v40 = vpop.permute.xlu0 %648  ;;  %677 = vst.msk [vmem:[%s2069_s21 + $0x14] sm:$0xf] %vm543_vm1, %v635_v37 }
 0x219   : > { %684 = vst.msk [vmem:[%s2069_s21 + $0x30] sm:$0xf] %vm543_vm1, %v649_v40  ;;  %1161 = vrot.lane.b32.xlu1 %v1888_v25, %s1785_s23 }
 0x21a   : > { %1159 = vrot.lane.b32.xlu0 %v1864_v18, %s1785_s23 }
 0x21b   : > { %v651_v42 = vpop.permute.xlu1 %650 }
 0x21c   : > { %v697_v43 = vpop.permute.xlu0 %696  ;;  %685 = vst.msk [vmem:[%s2069_s21 + $0x34] sm:$0xf] %vm543_vm1, %v651_v42 }
 0x21d   : > { %1511 = vst.msk [vmem:[%s1853_s30 + $0x50] sm:$0xf] %vm543_vm1, %v697_v43  ;;  %1165 = vrot.lane.b32.xlu1 %v1876_v22, %s1785_s23 }
 0x21e   : > { %1163 = vrot.lane.b32.xlu0 %v1857_v14, %s1785_s23 }
 0x21f   : > { %v699_v44 = vpop.permute.xlu1 %698 }
 0x220   : > { %v713_v45 = vpop.permute.xlu0 %712  ;;  %1512 = vst.msk [vmem:[%s1853_s30 + $0x54] sm:$0xf] %vm543_vm1, %v699_v44 }
 0x221   : > { %1519 = vst.msk [vmem:[%s1853_s30 + $0x70] sm:$0xf] %vm543_vm1, %v713_v45  ;;  %1169 = vrot.lane.b32.xlu1 %v1936_v41, %s1785_s23 }
 0x222   : > { %1167 = vrot.lane.b32.xlu0 %v1916_v36, %s1785_s23 }
 0x223   : > { %v715_v46 = vpop.permute.xlu1 %714 }
 0x224   : > { %v762_v47 = vpop.permute.xlu0 %761  ;;  %1520 = vst.msk [vmem:[%s1853_s30 + $0x74] sm:$0xf] %vm543_vm1, %v715_v46 }
 0x225   : > { %1527 = vst.msk [vmem:[%s2053_s15 + $0x50] sm:$0xf] %vm543_vm1, %v762_v47  ;;  %1173 = vrot.lane.b32.xlu1 %v1928_v39, %s1785_s23 }
 0x226   : > { %1171 = vrot.lane.b32.xlu0 %v1907_v32, %s1785_s23 }
 0x227   : > { %v764_v48 = vpop.permute.xlu1 %763 }
 0x228   : > { %v778_v49 = vpop.permute.xlu0 %777  ;;  %1528 = vst.msk [vmem:[%s2053_s15 + $0x54] sm:$0xf] %vm543_vm1, %v764_v48 }
 0x229   : > { %1535 = vst.msk [vmem:[%s2053_s15 + $0x70] sm:$0xf] %vm543_vm1, %v778_v49  ;;  %1210 = vrot.lane.b32.xlu1 %v1880_v24, %s1786_s24 }
 0x22a   : > { %1208 = vrot.lane.b32.xlu0 %v1859_v15, %s1786_s24 }
 0x22b   : > { %v780_v50 = vpop.permute.xlu1 %779 }
 0x22c   : > { %v827_v51 = vpop.permute.xlu0 %826  ;;  %1536 = vst.msk [vmem:[%s2053_s15 + $0x74] sm:$0xf] %vm543_vm1, %v780_v50 }
 0x22d   : > { %1543 = vst.msk [vmem:[%s2069_s21 + $0x50] sm:$0xf] %vm543_vm1, %v827_v51  ;;  %1214 = vrot.lane.b32.xlu1 %v1866_v19, %s1786_s24 }
 0x22e   : > { %1212 = vrot.lane.b32.xlu0 %v1855_v11, %s1786_s24 }
 0x22f   : > { %v829_v24 = vpop.permute.xlu1 %828 }
 0x230   : > { %v843_v52 = vpop.permute.xlu0 %842  ;;  %1544 = vst.msk [vmem:[%s2069_s21 + $0x54] sm:$0xf] %vm543_vm1, %v829_v24 }
 0x231   : > { %1551 = vst.msk [vmem:[%s2069_s21 + $0x70] sm:$0xf] %vm543_vm1, %v843_v52  ;;  %1218 = vrot.lane.b32.xlu1 %v1923_v38, %s1786_s24 }
 0x232   : > { %1216 = vrot.lane.b32.xlu0 %v1905_v30, %s1786_s24 }
 0x233   : > { %v845_v15 = vpop.permute.xlu1 %844 }
 0x234   : > { %v892_v19 = vpop.permute.xlu0 %891  ;;  %1552 = vst.msk [vmem:[%s2069_s21 + $0x74] sm:$0xf] %vm543_vm1, %v845_v15 }
 0x235   : > { %1559 = vst.msk [vmem:[%s1853_s30 + $0x90] sm:$0xf] %vm543_vm1, %v892_v19  ;;  %1222 = vrot.lane.b32.xlu1 %v1914_v34, %s1786_s24 }
 0x236   : > { %1220 = vrot.lane.b32.xlu0 %v1903_v27, %s1786_s24 }
 0x237   : > { %v894_v11 = vpop.permute.xlu1 %893 }
 0x238   : > { %v908_v38 = vpop.permute.xlu0 %907  ;;  %1560 = vst.msk [vmem:[%s1853_s30 + $0x94] sm:$0xf] %vm543_vm1, %v894_v11 }
 0x239   : > { %1567 = vst.msk [vmem:[%s1853_s30 + $0xb0] sm:$0xf] %vm543_vm1, %v908_v38  ;;  %1226 = vrot.lane.b32.xlu1 %v1888_v25, %s1786_s24 }
 0x23a   : > { %1224 = vrot.lane.b32.xlu0 %v1864_v18, %s1786_s24 }
 0x23b   : > { %v910_v30 = vpop.permute.xlu1 %909 }
 0x23c   : > { %v957_v34 = vpop.permute.xlu0 %956  ;;  %1568 = vst.msk [vmem:[%s1853_s30 + $0xb4] sm:$0xf] %vm543_vm1, %v910_v30 }
 0x23d   : > { %1575 = vst.msk [vmem:[%s2053_s15 + $0x90] sm:$0xf] %vm543_vm1, %v957_v34  ;;  %1230 = vrot.lane.b32.xlu1 %v1876_v22, %s1786_s24 }
 0x23e   : > { %1228 = vrot.lane.b32.xlu0 %v1857_v14, %s1786_s24 }
 0x23f   : > { %v959_v25 = vpop.permute.xlu1 %958 }
 0x240   : > { %v973_v27 = vpop.permute.xlu0 %972  ;;  %1576 = vst.msk [vmem:[%s2053_s15 + $0x94] sm:$0xf] %vm543_vm1, %v959_v25 }
 0x241   : > { %1583 = vst.msk [vmem:[%s2053_s15 + $0xb0] sm:$0xf] %vm543_vm1, %v973_v27  ;;  %1234 = vrot.lane.b32.xlu1 %v1936_v41, %s1786_s24 }
 0x242   : > { %1232 = vrot.lane.b32.xlu0 %v1916_v36, %s1786_s24 }
 0x243   : > { %v975_v18 = vpop.permute.xlu1 %974 }
 0x244   : > { %v1022_v22 = vpop.permute.xlu0 %1021  ;;  %1584 = vst.msk [vmem:[%s2053_s15 + $0xb4] sm:$0xf] %vm543_vm1, %v975_v18 }
 0x245   : > { %1591 = vst.msk [vmem:[%s2069_s21 + $0x90] sm:$0xf] %vm543_vm1, %v1022_v22  ;;  %1238 = vrot.lane.b32.xlu1 %v1928_v39, %s1786_s24 }
 0x246   : > { %1236 = vrot.lane.b32.xlu0 %v1907_v32, %s1786_s24 }
 0x247   : > { %v1024_v14 = vpop.permute.xlu1 %1023 }
 0x248   : > { %v1026_v41 = vpop.permute.xlu0 %1025  ;;  %1592 = vst.msk [vmem:[%s2069_s21 + $0x94] sm:$0xf] %vm543_vm1, %v1024_v14 }
 0x249   : > { %1593 = vst.msk [vmem:[%s2069_s21 + $0x98] sm:$0xf] %vm543_vm1, %v1026_v41 }
 0x24b   : > { %v1032_v36 = vpop.permute.xlu1 %1031 }
 0x24c   : > { %v1030_v53 = vpop.permute.xlu0 %1029  ;;  %1596 = vst.msk [vmem:[%s2069_s21 + $0xa4] sm:$0xf] %vm543_vm1, %v1032_v36 }
 0x24d   : > { %1595 = vst.msk [vmem:[%s2069_s21 + $0xa0] sm:$0xf] %vm543_vm1, %v1030_v53 }
 0x24f   : > { %v1036_v39 = vpop.permute.xlu1 %1035 }
 0x250   : > { %v1034_v54 = vpop.permute.xlu0 %1033  ;;  %1598 = vst.msk [vmem:[%s2069_s21 + $0xac] sm:$0xf] %vm543_vm1, %v1036_v39 }
 0x251   : > { %1597 = vst.msk [vmem:[%s2069_s21 + $0xa8] sm:$0xf] %vm543_vm1, %v1034_v54 }
 0x253   : > { %v1040_v32 = vpop.permute.xlu1 %1039 }
 0x254   : > { %v1038_v55 = vpop.permute.xlu0 %1037  ;;  %1600 = vst.msk [vmem:[%s2069_s21 + $0xb4] sm:$0xf] %vm543_vm1, %v1040_v32 }
 0x255   : > { %1599 = vst.msk [vmem:[%s2069_s21 + $0xb0] sm:$0xf] %vm543_vm1, %v1038_v55 }
 0x257   : > { %v1044_v56 = vpop.permute.xlu1 %1043 }
 0x258   : > { %v1042_v57 = vpop.permute.xlu0 %1041  ;;  %1602 = vst.msk [vmem:[%s2069_s21 + $0xbc] sm:$0xf] %vm543_vm1, %v1044_v56 }
 0x259   : > { %1601 = vst.msk [vmem:[%s2069_s21 + $0xb8] sm:$0xf] %vm543_vm1, %v1042_v57 }
 0x25b   : > { %v1081_v58 = vpop.permute.xlu1 %1080 }
 0x25c   : > { %v1079_v59 = vpop.permute.xlu0 %1078  ;;  %1604 = vst.msk [vmem:[%s1853_s30 + $0xc4] sm:$0xf] %vm543_vm1, %v1081_v58 }
 0x25d   : > { %1603 = vst.msk [vmem:[%s1853_s30 + $0xc0] sm:$0xf] %vm543_vm1, %v1079_v59 }
 0x25f   : > { %v1085_v60 = vpop.permute.xlu1 %1084 }
 0x260   : > { %v1083_v61 = vpop.permute.xlu0 %1082  ;;  %1606 = vst.msk [vmem:[%s1853_s30 + $0xcc] sm:$0xf] %vm543_vm1, %v1085_v60 }
 0x261   : > { %1605 = vst.msk [vmem:[%s1853_s30 + $0xc8] sm:$0xf] %vm543_vm1, %v1083_v61 }
 0x263   : > { %v1089_v62 = vpop.permute.xlu1 %1088 }
 0x264   : > { %v1087_v63 = vpop.permute.xlu0 %1086  ;;  %1608 = vst.msk [vmem:[%s1853_s30 + $0xd4] sm:$0xf] %vm543_vm1, %v1089_v62 }
 0x265   : > { %1607 = vst.msk [vmem:[%s1853_s30 + $0xd0] sm:$0xf] %vm543_vm1, %v1087_v63 }
 0x267   : > { %v1093_v0 = vpop.permute.xlu1 %1092 }
 0x268   : > { %v1091_v1 = vpop.permute.xlu0 %1090  ;;  %1610 = vst.msk [vmem:[%s1853_s30 + $0xdc] sm:$0xf] %vm543_vm1, %v1093_v0 }
 0x269   : > { %1609 = vst.msk [vmem:[%s1853_s30 + $0xd8] sm:$0xf] %vm543_vm1, %v1091_v1 }
 0x26b   : > { %v1097_v2 = vpop.permute.xlu1 %1096 }
 0x26c   : > { %v1095_v3 = vpop.permute.xlu0 %1094  ;;  %1612 = vst.msk [vmem:[%s1853_s30 + $0xe4] sm:$0xf] %vm543_vm1, %v1097_v2 }
 0x26d   : > { %1611 = vst.msk [vmem:[%s1853_s30 + $0xe0] sm:$0xf] %vm543_vm1, %v1095_v3 }
 0x26f   : > { %v1101_v4 = vpop.permute.xlu1 %1100 }
 0x270   : > { %v1099_v5 = vpop.permute.xlu0 %1098  ;;  %1614 = vst.msk [vmem:[%s1853_s30 + $0xec] sm:$0xf] %vm543_vm1, %v1101_v4 }
 0x271   : > { %1613 = vst.msk [vmem:[%s1853_s30 + $0xe8] sm:$0xf] %vm543_vm1, %v1099_v5 }
 0x273   : > { %v1105_v6 = vpop.permute.xlu1 %1104 }
 0x274   : > { %v1103_v7 = vpop.permute.xlu0 %1102  ;;  %1616 = vst.msk [vmem:[%s1853_s30 + $0xf4] sm:$0xf] %vm543_vm1, %v1105_v6 }
 0x275   : > { %1615 = vst.msk [vmem:[%s1853_s30 + $0xf0] sm:$0xf] %vm543_vm1, %v1103_v7 }
 0x277   : > { %v1109_v8 = vpop.permute.xlu1 %1108 }
 0x278   : > { %v1107_v9 = vpop.permute.xlu0 %1106  ;;  %1618 = vst.msk [vmem:[%s1853_s30 + $0xfc] sm:$0xf] %vm543_vm1, %v1109_v8 }
 0x279   : > { %1617 = vst.msk [vmem:[%s1853_s30 + $0xf8] sm:$0xf] %vm543_vm1, %v1107_v9 }
 0x27b   : > { %v1146_v10 = vpop.permute.xlu1 %1145 }
 0x27c   : > { %v1144_v12 = vpop.permute.xlu0 %1143  ;;  %1620 = vst.msk [vmem:[%s2053_s15 + $0xc4] sm:$0xf] %vm543_vm1, %v1146_v10 }
 0x27d   : > { %1619 = vst.msk [vmem:[%s2053_s15 + $0xc0] sm:$0xf] %vm543_vm1, %v1144_v12 }
 0x27f   : > { %v1150_v13 = vpop.permute.xlu1 %1149 }
 0x280   : > { %v1148_v16 = vpop.permute.xlu0 %1147  ;;  %1622 = vst.msk [vmem:[%s2053_s15 + $0xcc] sm:$0xf] %vm543_vm1, %v1150_v13 }
 0x281   : > { %1621 = vst.msk [vmem:[%s2053_s15 + $0xc8] sm:$0xf] %vm543_vm1, %v1148_v16 }
 0x283   : > { %v1154_v17 = vpop.permute.xlu1 %1153 }
 0x284   : > { %v1152_v20 = vpop.permute.xlu0 %1151  ;;  %1624 = vst.msk [vmem:[%s2053_s15 + $0xd4] sm:$0xf] %vm543_vm1, %v1154_v17 }
 0x285   : > { %1623 = vst.msk [vmem:[%s2053_s15 + $0xd0] sm:$0xf] %vm543_vm1, %v1152_v20 }
 0x287   : > { %v1158_v21 = vpop.permute.xlu1 %1157 }
 0x288   : > { %v1156_v23 = vpop.permute.xlu0 %1155  ;;  %1626 = vst.msk [vmem:[%s2053_s15 + $0xdc] sm:$0xf] %vm543_vm1, %v1158_v21 }
 0x289   : > { %1625 = vst.msk [vmem:[%s2053_s15 + $0xd8] sm:$0xf] %vm543_vm1, %v1156_v23 }
 0x28b   : > { %v1162_v26 = vpop.permute.xlu1 %1161 }
 0x28c   : > { %v1160_v28 = vpop.permute.xlu0 %1159  ;;  %1628 = vst.msk [vmem:[%s2053_s15 + $0xe4] sm:$0xf] %vm543_vm1, %v1162_v26 }
 0x28d   : > { %1627 = vst.msk [vmem:[%s2053_s15 + $0xe0] sm:$0xf] %vm543_vm1, %v1160_v28 }
 0x28f   : > { %v1166_v29 = vpop.permute.xlu1 %1165 }
 0x290   : > { %v1164_v31 = vpop.permute.xlu0 %1163  ;;  %1630 = vst.msk [vmem:[%s2053_s15 + $0xec] sm:$0xf] %vm543_vm1, %v1166_v29 }
 0x291   : > { %1629 = vst.msk [vmem:[%s2053_s15 + $0xe8] sm:$0xf] %vm543_vm1, %v1164_v31 }
 0x293   : > { %v1170_v33 = vpop.permute.xlu1 %1169 }
 0x294   : > { %v1168_v35 = vpop.permute.xlu0 %1167  ;;  %1632 = vst.msk [vmem:[%s2053_s15 + $0xf4] sm:$0xf] %vm543_vm1, %v1170_v33 }
 0x295   : > { %1631 = vst.msk [vmem:[%s2053_s15 + $0xf0] sm:$0xf] %vm543_vm1, %v1168_v35 }
 0x297   : > { %v1174_v37 = vpop.permute.xlu1 %1173 }
 0x298   : > { %v1172_v40 = vpop.permute.xlu0 %1171  ;;  %1634 = vst.msk [vmem:[%s2053_s15 + $0xfc] sm:$0xf] %vm543_vm1, %v1174_v37 }
 0x299   : > { %1633 = vst.msk [vmem:[%s2053_s15 + $0xf8] sm:$0xf] %vm543_vm1, %v1172_v40 }
 0x29b   : > { %v1211_v42 = vpop.permute.xlu1 %1210 }
 0x29c   : > { %v1209_v43 = vpop.permute.xlu0 %1208  ;;  %1636 = vst.msk [vmem:[%s2069_s21 + $0xc4] sm:$0xf] %vm543_vm1, %v1211_v42 }
 0x29d   : > { %1635 = vst.msk [vmem:[%s2069_s21 + $0xc0] sm:$0xf] %vm543_vm1, %v1209_v43 }
 0x29f   : > { %v1215_v44 = vpop.permute.xlu1 %1214 }
 0x2a0   : > { %v1213_v45 = vpop.permute.xlu0 %1212  ;;  %1638 = vst.msk [vmem:[%s2069_s21 + $0xcc] sm:$0xf] %vm543_vm1, %v1215_v44 }
 0x2a1   : > { %1637 = vst.msk [vmem:[%s2069_s21 + $0xc8] sm:$0xf] %vm543_vm1, %v1213_v45 }
 0x2a3   : > { %v1219_v46 = vpop.permute.xlu1 %1218 }
 0x2a4   : > { %v1217_v47 = vpop.permute.xlu0 %1216  ;;  %1640 = vst.msk [vmem:[%s2069_s21 + $0xd4] sm:$0xf] %vm543_vm1, %v1219_v46 }
 0x2a5   : > { %1639 = vst.msk [vmem:[%s2069_s21 + $0xd0] sm:$0xf] %vm543_vm1, %v1217_v47 }
 0x2a7   : > { %v1223_v48 = vpop.permute.xlu1 %1222 }
 0x2a8   : > { %v1221_v49 = vpop.permute.xlu0 %1220  ;;  %1642 = vst.msk [vmem:[%s2069_s21 + $0xdc] sm:$0xf] %vm543_vm1, %v1223_v48 }
 0x2a9   : > { %1641 = vst.msk [vmem:[%s2069_s21 + $0xd8] sm:$0xf] %vm543_vm1, %v1221_v49 }
 0x2ab   : > { %v1227_v50 = vpop.permute.xlu1 %1226 }
 0x2ac   : > { %v1225_v51 = vpop.permute.xlu0 %1224  ;;  %1644 = vst.msk [vmem:[%s2069_s21 + $0xe4] sm:$0xf] %vm543_vm1, %v1227_v50 }
 0x2ad   : > { %1643 = vst.msk [vmem:[%s2069_s21 + $0xe0] sm:$0xf] %vm543_vm1, %v1225_v51 }
 0x2af   : > { %v1231_v24 = vpop.permute.xlu1 %1230 }
 0x2b0   : > { %v1229_v52 = vpop.permute.xlu0 %1228  ;;  %1646 = vst.msk [vmem:[%s2069_s21 + $0xec] sm:$0xf] %vm543_vm1, %v1231_v24 }
 0x2b1   : > { %1645 = vst.msk [vmem:[%s2069_s21 + $0xe8] sm:$0xf] %vm543_vm1, %v1229_v52 }
 0x2b3   : > { %v1235_v15 = vpop.permute.xlu1 %1234 }
 0x2b4   : > { %v1233_v19 = vpop.permute.xlu0 %1232  ;;  %1648 = vst.msk [vmem:[%s2069_s21 + $0xf4] sm:$0xf] %vm543_vm1, %v1235_v15 }
 0x2b5   : > { %1647 = vst.msk [vmem:[%s2069_s21 + $0xf0] sm:$0xf] %vm543_vm1, %v1233_v19 }
 0x2b7   : > { %v1239_v11 = vpop.permute.xlu1 %1238 }
 0x2b8   : > { %v1237_v38 = vpop.permute.xlu0 %1236  ;;  %1650 = vst.msk [vmem:[%s2069_s21 + $0xfc] sm:$0xf] %vm543_vm1, %v1239_v11 }
 0x2b9   : > { %1649 = vst.msk [vmem:[%s2069_s21 + $0xf8] sm:$0xf] %vm543_vm1, %v1237_v38 }
 0x2ba PF: > { %s15_s17 = sadd.s32 1, %s1774_s17   ;;  %s2665_s15 = smov %s1770_s16 }
 0x2bb   : > { %p12_p5 = scmp.ge.s32.totalorder %s15_s17, 4   ;;  %s2666_s16 = smov %s2668_s18 }
 0x2bd   :  { %14 = sbr.rel (!%p12_p5) target bundleno = 2 (0x2), region = 91 }

</bundles_post_ra>
